<compile_context>
chip_gen: v7x
topology: tpu7x:2x2x1
jax: 0.10.0
libtpu: 0.0.40
codegen_flags: <defaults>
</compile_context>

<pallas_src>
import functools

import jax
import jax.numpy as jnp
from jax.experimental import pallas as pl
from jax.experimental.pallas import tpu as pltpu


def _layernorm(x, w, b, eps=1e-5):
    # x: (N, D), w/b: (1, D). PyTorch LayerNorm: biased variance, eps inside sqrt.
    mu = jnp.mean(x, axis=-1, keepdims=True)
    var = jnp.mean((x - mu) ** 2, axis=-1, keepdims=True)
    return (x - mu) * jax.lax.rsqrt(var + eps) * w + b


def residual_attention_kernel(
    x_ref,
    ln0_w_ref, ln0_b_ref,
    wqkv_ref, bqkv_ref,
    wo_ref, bo_ref,
    ln1_w_ref, ln1_b_ref,
    w1_ref, b1_ref, w2_ref, b2_ref,
    ln2_w_ref, ln2_b_ref,
    o_ref,
    *, num_heads,
):
    TB, S, D = x_ref.shape
    H = num_heads
    hd = D // H
    N = TB * S
    scale = jnp.float32(1.0 / (hd ** 0.5))

    # Flatten batch*seq into rows: every dense projection sees one lane-dense
    # (N, D) slab instead of per-element (S, D) tiles. Keep math in f32.
    x = x_ref[...].reshape(N, D).astype(jnp.float32)

    # --- pre-attention layer norm ---
    x2 = _layernorm(x, ln0_w_ref[...], ln0_b_ref[...])

    # --- fused QKV projection: one (N, D) x (D, 3D) MXU matmul ---
    qkv = jnp.dot(x2, wqkv_ref[...], preferred_element_type=jnp.float32) + bqkv_ref[...]

    def split_heads(t):
        # (N, D) -> (TB*H, S, hd), head-major so attention is one batched matmul.
        t = t.reshape(TB, S, H, hd)
        t = jnp.transpose(t, (0, 2, 1, 3))
        return t.reshape(TB * H, S, hd)

    q = split_heads(qkv[:, :D]) * scale      # fold 1/sqrt(hd) into q (cheap dim)
    k = split_heads(qkv[:, D:2 * D])
    v = split_heads(qkv[:, 2 * D:])

    # --- multi-head attention, batched over all (batch, head) pairs.
    # Contraction is on the last dim of both operands: no explicit transpose.
    s = jnp.einsum('bqd,bkd->bqk', q, k, preferred_element_type=jnp.float32)
    s = s - jnp.max(s, axis=-1, keepdims=True)
    p = jnp.exp(s)
    denom = jnp.sum(p, axis=-1, keepdims=True)
    p = p * pl.reciprocal(denom, approx=True)          # EUP vrcp, frees VALU slots
    attn = jnp.einsum('bqk,bkd->bqd', p, v, preferred_element_type=jnp.float32)

    # (TB*H, S, hd) -> (N, D)
    attn = attn.reshape(TB, H, S, hd)
    attn = jnp.transpose(attn, (0, 2, 1, 3)).reshape(N, D)

    # --- attention output projection + residual ---
    x1 = x + jnp.dot(attn, wo_ref[...], preferred_element_type=jnp.float32) + bo_ref[...]

    # --- MLP block (num_mlps = 1): LN -> Linear -> ReLU -> Linear -> residual ---
    x2 = _layernorm(x1, ln1_w_ref[...], ln1_b_ref[...])
    h = jnp.dot(x2, w1_ref[...], preferred_element_type=jnp.float32) + b1_ref[...]
    h = jnp.maximum(h, 0.0)
    x1 = x1 + jnp.dot(h, w2_ref[...], preferred_element_type=jnp.float32) + b2_ref[...]

    # --- final layer norm ---
    out = _layernorm(x1, ln2_w_ref[...], ln2_b_ref[...])
    o_ref[...] = out.reshape(TB, S, D).astype(o_ref.dtype)


def _pick_block_batch(B, S, D, itemsize=4, budget_bytes=512 * 1024):
    """Largest batch block that (a) divides B, (b) keeps the x block small,
    and (c) leaves >= 2 grid steps when B >= 2 (so both v7x TCs get work)."""
    best = 1
    for tb in range(1, B + 1):
        if B % tb:
            continue
        if tb * S * D * itemsize > budget_bytes:
            break
        if B >= 2 and B // tb < 2:
            continue
        best = tb
    return best


def residual_attention(x, params, num_heads, block_batch=None):
    B, S, D = x.shape
    assert D % num_heads == 0
    if block_batch is None:
        block_batch = _pick_block_batch(B, S, D, jnp.dtype(x.dtype).itemsize)
    TB = block_batch
    assert B % TB == 0, "block_batch must divide batch size"
    grid = (B // TB,)

    const = lambda shape: pl.BlockSpec(shape, lambda b: (0, 0))
    in_specs = [
        pl.BlockSpec((TB, S, D), lambda b: (b, 0, 0)),     # x
        const((1, D)), const((1, D)),                      # ln0 w, b
        const((D, 3 * D)), const((1, 3 * D)),              # wqkv, bqkv
        const((D, D)), const((1, D)),                      # wo, bo
        const((1, D)), const((1, D)),                      # ln1 w, b
        const((D, D)), const((1, D)),                      # mlp linear1
        const((D, D)), const((1, D)),                      # mlp linear2
        const((1, D)), const((1, D)),                      # ln2 w, b
    ]

    # Rough VMEM budget: (double-buffered) weights + io blocks + intermediates.
    # For large D one would single-buffer the constant weight blocks / tile the
    # D-contraction over an extra "arbitrary" grid axis (v7x 64 MiB budget).
    weight_bytes = (D * 3 * D + 3 * D + 3 * (D * D + D) + 6 * D) * 4
    io_bytes = 2 * TB * S * D * 4
    interm_bytes = (3 * TB * S * D + 2 * TB * num_heads * S * S + 4 * TB * S * D) * 4
    est = 2 * weight_bytes + 2 * io_bytes + 2 * interm_bytes + (4 << 20)
    vmem_limit = int(min(max(est, 32 << 20), 64 << 20))

    kernel = functools.partial(residual_attention_kernel, num_heads=num_heads)
    return pl.pallas_call(
        kernel,
        out_shape=jax.ShapeDtypeStruct((B, S, D), x.dtype),
        grid_spec=pltpu.PrefetchScalarGridSpec(
            num_scalar_prefetch=0,
            grid=grid,
            in_specs=in_specs,
            out_specs=pl.BlockSpec((TB, S, D), lambda b: (b, 0, 0)),
        ),
        compiler_params=pltpu.CompilerParams(
            dimension_semantics=("parallel",),
            vmem_limit_bytes=vmem_limit,
        ),
    )(x, *params)


def reference_forward(x, params, num_heads):
    """Pure-JAX reference mirroring torch semantics, for correctness check."""
    (ln0_w, ln0_b, wqkv, bqkv, wo, bo,
     ln1_w, ln1_b, w1, b1, w2, b2, ln2_w, ln2_b) = params
    B, S, D = x.shape
    H = num_heads
    hd = D // H

    def ln(v, w, b):
        mu = jnp.mean(v, -1, keepdims=True)
        var = jnp.mean((v - mu) ** 2, -1, keepdims=True)
        return (v - mu) / jnp.sqrt(var + 1e-5) * w + b

    x2 = ln(x, ln0_w, ln0_b)
    qkv = x2 @ wqkv + bqkv
    q, k, v = qkv[..., :D], qkv[..., D:2 * D], qkv[..., 2 * D:]
    qh = q.reshape(B, S, H, hd).transpose(0, 2, 1, 3)
    kh = k.reshape(B, S, H, hd).transpose(0, 2, 1, 3)
    vh = v.reshape(B, S, H, hd).transpose(0, 2, 1, 3)
    s = jnp.einsum('bhqd,bhkd->bhqk', qh, kh) / jnp.sqrt(jnp.float32(hd))
    p = jax.nn.softmax(s, axis=-1)
    a = jnp.einsum('bhqk,bhkd->bhqd', p, vh).transpose(0, 2, 1, 3).reshape(B, S, D)
    x3 = a @ wo + bo
    x1 = x + x3
    x2 = ln(x1, ln1_w, ln1_b)
    m = jnp.maximum(x2 @ w1 + b1, 0.0) @ w2 + b2
    x1 = x1 + m
    return ln(x1, ln2_w, ln2_b)


def make_params(key, num_dims):
    D = num_dims
    ks = jax.random.split(key, 16)
    n = lambda k, shape, s=0.1: s * jax.random.normal(k, shape, jnp.float32)
    params = (
        1.0 + n(ks[0], (1, D)), n(ks[1], (1, D)),          # ln0 weight, bias
        n(ks[2], (D, 3 * D)), n(ks[3], (1, 3 * D)),        # in_proj_weight.T, in_proj_bias
        n(ks[4], (D, D)), n(ks[5], (1, D)),                # out_proj weight.T, bias
        1.0 + n(ks[6], (1, D)), n(ks[7], (1, D)),          # ln1 weight, bias
        n(ks[8], (D, D)), n(ks[9], (1, D)),                # mlp linear1 weight.T, bias
        n(ks[10], (D, D)), n(ks[11], (1, D)),              # mlp linear2 weight.T, bias
        1.0 + n(ks[12], (1, D)), n(ks[13], (1, D)),        # ln2 weight, bias
    )
    return params


if __name__ == "__main__":
    B, S, D, H = 2, 8, 32, 4          # batch, seq, num_dims, num_heads (num_mlps=1)
    key = jax.random.PRNGKey(0)
    kx, kp = jax.random.split(key)
    x = jax.random.normal(kx, (B, S, D), jnp.float32)
    params = make_params(kp, D)

    out = residual_attention(x, params, num_heads=H)
    out = jax.block_until_ready(out)

    ref = reference_forward(x, params, num_heads=H)
    assert out.shape == (B, S, D)
    # Tolerance covers the EUP approximate-reciprocal softmax (~2^-12 rel error).
    assert jnp.allclose(out, ref, rtol=2e-3, atol=2e-3), \
        f"max abs diff {jnp.max(jnp.abs(out - ref))}"

    print("KERNEL_OK")
</pallas_src>

<mosaic_0001>
module attributes {stable_mosaic.version = 11 : i64} {
  func.func @residual_attention_kernel(%arg0: i32, %arg1: memref<1x8x32xf32, #tpu.memory_space<vmem>>, %arg2: memref<1x32xf32, #tpu.memory_space<vmem>>, %arg3: memref<1x32xf32, #tpu.memory_space<vmem>>, %arg4: memref<32x96xf32, #tpu.memory_space<vmem>>, %arg5: memref<1x96xf32, #tpu.memory_space<vmem>>, %arg6: memref<32x32xf32, #tpu.memory_space<vmem>>, %arg7: memref<1x32xf32, #tpu.memory_space<vmem>>, %arg8: memref<1x32xf32, #tpu.memory_space<vmem>>, %arg9: memref<1x32xf32, #tpu.memory_space<vmem>>, %arg10: memref<32x32xf32, #tpu.memory_space<vmem>>, %arg11: memref<1x32xf32, #tpu.memory_space<vmem>>, %arg12: memref<32x32xf32, #tpu.memory_space<vmem>>, %arg13: memref<1x32xf32, #tpu.memory_space<vmem>>, %arg14: memref<1x32xf32, #tpu.memory_space<vmem>>, %arg15: memref<1x32xf32, #tpu.memory_space<vmem>>, %arg16: memref<1x8x32xf32, #tpu.memory_space<vmem>>) attributes {dimension_semantics = [#tpu.dimension_semantics<parallel>], iteration_bounds = array<i64: 2>, scalar_prefetch = 0 : i64, scratch_operands = 0 : i64, tpu.core_type = #tpu.core_type<tc>, window_params = [{transform_indices = @transform_0, window_bounds = array<i64: 1, 8, 32>}, {pipeline_mode = #tpu.pipeline_mode<synchronous>, transform_indices = @transform_1, window_bounds = array<i64: 1, 32>}, {pipeline_mode = #tpu.pipeline_mode<synchronous>, transform_indices = @transform_2, window_bounds = array<i64: 1, 32>}, {pipeline_mode = #tpu.pipeline_mode<synchronous>, transform_indices = @transform_3, window_bounds = array<i64: 32, 96>}, {pipeline_mode = #tpu.pipeline_mode<synchronous>, transform_indices = @transform_4, window_bounds = array<i64: 1, 96>}, {pipeline_mode = #tpu.pipeline_mode<synchronous>, transform_indices = @transform_5, window_bounds = array<i64: 32, 32>}, {pipeline_mode = #tpu.pipeline_mode<synchronous>, transform_indices = @transform_6, window_bounds = array<i64: 1, 32>}, {pipeline_mode = #tpu.pipeline_mode<synchronous>, transform_indices = @transform_7, window_bounds = array<i64: 1, 32>}, {pipeline_mode = #tpu.pipeline_mode<synchronous>, transform_indices = @transform_8, window_bounds = array<i64: 1, 32>}, {pipeline_mode = #tpu.pipeline_mode<synchronous>, transform_indices = @transform_9, window_bounds = array<i64: 32, 32>}, {pipeline_mode = #tpu.pipeline_mode<synchronous>, transform_indices = @transform_10, window_bounds = array<i64: 1, 32>}, {pipeline_mode = #tpu.pipeline_mode<synchronous>, transform_indices = @transform_11, window_bounds = array<i64: 32, 32>}, {pipeline_mode = #tpu.pipeline_mode<synchronous>, transform_indices = @transform_12, window_bounds = array<i64: 1, 32>}, {pipeline_mode = #tpu.pipeline_mode<synchronous>, transform_indices = @transform_13, window_bounds = array<i64: 1, 32>}, {pipeline_mode = #tpu.pipeline_mode<synchronous>, transform_indices = @transform_14, window_bounds = array<i64: 1, 32>}, {transform_indices = @transform_15, window_bounds = array<i64: 1, 8, 32>}]} {
    %c0 = arith.constant 0 : index
    %c0_0 = arith.constant 0 : index
    %c0_1 = arith.constant 0 : index
    %0 = vector.load %arg1[%c0, %c0_0, %c0_1] : memref<1x8x32xf32, #tpu.memory_space<vmem>>, vector<1x8x32xf32>
    %1 = vector.shape_cast %0 : vector<1x8x32xf32> to vector<8x32xf32>
    %c0_2 = arith.constant 0 : index
    %c0_3 = arith.constant 0 : index
    %2 = vector.load %arg2[%c0_2, %c0_3] : memref<1x32xf32, #tpu.memory_space<vmem>>, vector<1x32xf32>
    %c0_4 = arith.constant 0 : index
    %c0_5 = arith.constant 0 : index
    %3 = vector.load %arg3[%c0_4, %c0_5] : memref<1x32xf32, #tpu.memory_space<vmem>>, vector<1x32xf32>
    %cst = arith.constant dense<0.000000e+00> : vector<8xf32>
    %4 = vector.multi_reduction <add>, %1, %cst [1] : vector<8x32xf32> to vector<8xf32>
    %5 = vector.shape_cast %4 : vector<8xf32> to vector<8x1xf32>
    %cst_6 = arith.constant 3.200000e+01 : f32
    %6 = vector.broadcast %cst_6 : f32 to vector<8x1xf32>
    %7 = arith.divf %5, %6 : vector<8x1xf32>
    %8 = vector.broadcast %7 : vector<8x1xf32> to vector<8x32xf32>
    %9 = arith.subf %1, %8 : vector<8x32xf32>
    %10 = arith.mulf %9, %9 : vector<8x32xf32>
    %cst_7 = arith.constant dense<0.000000e+00> : vector<8xf32>
    %11 = vector.multi_reduction <add>, %10, %cst_7 [1] : vector<8x32xf32> to vector<8xf32>
    %12 = vector.shape_cast %11 : vector<8xf32> to vector<8x1xf32>
    %cst_8 = arith.constant 3.200000e+01 : f32
    %13 = vector.broadcast %cst_8 : f32 to vector<8x1xf32>
    %14 = arith.divf %12, %13 : vector<8x1xf32>
    %15 = vector.broadcast %7 : vector<8x1xf32> to vector<8x32xf32>
    %16 = arith.subf %1, %15 : vector<8x32xf32>
    %cst_9 = arith.constant 9.99999974E-6 : f32
    %17 = vector.broadcast %cst_9 : f32 to vector<8x1xf32>
    %18 = arith.addf %14, %17 : vector<8x1xf32>
    %19 = math.rsqrt %18 : vector<8x1xf32>
    %20 = vector.broadcast %19 : vector<8x1xf32> to vector<8x32xf32>
    %21 = arith.mulf %16, %20 : vector<8x32xf32>
    %22 = vector.broadcast %2 : vector<1x32xf32> to vector<8x32xf32>
    %23 = arith.mulf %21, %22 : vector<8x32xf32>
    %24 = vector.broadcast %3 : vector<1x32xf32> to vector<8x32xf32>
    %25 = arith.addf %23, %24 : vector<8x32xf32>
    %c0_10 = arith.constant 0 : index
    %c0_11 = arith.constant 0 : index
    %26 = vector.load %arg4[%c0_10, %c0_11] : memref<32x96xf32, #tpu.memory_space<vmem>>, vector<32x96xf32>
    %cst_12 = arith.constant dense<0.000000e+00> : vector<8x96xf32>
    %27 = tpu.matmul %25, %26, %cst_12 {dimension_numbers = #tpu.dot_dimension_numbers<[1], [0], [0], [1], [0, 0, 1, 1], [], []>} : vector<8x32xf32>, vector<32x96xf32>, vector<8x96xf32> -> vector<8x96xf32>
    %c0_13 = arith.constant 0 : index
    %c0_14 = arith.constant 0 : index
    %28 = vector.load %arg5[%c0_13, %c0_14] : memref<1x96xf32, #tpu.memory_space<vmem>>, vector<1x96xf32>
    %29 = vector.broadcast %28 : vector<1x96xf32> to vector<8x96xf32>
    %30 = arith.addf %27, %29 : vector<8x96xf32>
    %31 = vector.extract_strided_slice %30 {offsets = [0, 0], sizes = [8, 32], strides = [1, 1]} : vector<8x96xf32> to vector<8x32xf32>
    %32 = vector.shape_cast %31 : vector<8x32xf32> to vector<1x8x4x8xf32>
    %33 = tpu.transpose %32, [0, 2, 1, 3] : vector<1x8x4x8xf32> -> vector<1x4x8x8xf32>
    %34 = vector.shape_cast %33 : vector<1x4x8x8xf32> to vector<4x8x8xf32>
    %cst_15 = arith.constant 0.353553385 : f32
    %35 = vector.broadcast %cst_15 : f32 to vector<4x8x8xf32>
    %36 = arith.mulf %34, %35 : vector<4x8x8xf32>
    %37 = vector.extract_strided_slice %30 {offsets = [0, 32], sizes = [8, 32], strides = [1, 1]} : vector<8x96xf32> to vector<8x32xf32>
    %38 = vector.shape_cast %37 : vector<8x32xf32> to vector<1x8x4x8xf32>
    %39 = tpu.transpose %38, [0, 2, 1, 3] : vector<1x8x4x8xf32> -> vector<1x4x8x8xf32>
    %40 = vector.shape_cast %39 : vector<1x4x8x8xf32> to vector<4x8x8xf32>
    %41 = vector.extract_strided_slice %30 {offsets = [0, 64], sizes = [8, 32], strides = [1, 1]} : vector<8x96xf32> to vector<8x32xf32>
    %42 = vector.shape_cast %41 : vector<8x32xf32> to vector<1x8x4x8xf32>
    %43 = tpu.transpose %42, [0, 2, 1, 3] : vector<1x8x4x8xf32> -> vector<1x4x8x8xf32>
    %44 = vector.shape_cast %43 : vector<1x4x8x8xf32> to vector<4x8x8xf32>
    "tpu.trace_start"() <{level = 10 : i32, message = "bqd,bkd->bqk"}> : () -> ()
    %cst_16 = arith.constant dense<0.000000e+00> : vector<4x8x8xf32>
    %45 = tpu.matmul %36, %40, %cst_16 {dimension_numbers = #tpu.dot_dimension_numbers<[2], [2], [1], [1], [0, 0, 0, 1, 1, 1], [0], [0]>} : vector<4x8x8xf32>, vector<4x8x8xf32>, vector<4x8x8xf32> -> vector<4x8x8xf32>
    "tpu.trace_stop"() : () -> ()
    %cst_17 = arith.constant dense<0xFF800000> : vector<4x8xf32>
    %46 = vector.multi_reduction <maximumf>, %45, %cst_17 [2] : vector<4x8x8xf32> to vector<4x8xf32>
    %47 = vector.shape_cast %46 : vector<4x8xf32> to vector<4x8x1xf32>
    %48 = vector.broadcast %47 : vector<4x8x1xf32> to vector<4x8x8xf32>
    %49 = arith.subf %45, %48 : vector<4x8x8xf32>
    %50 = math.exp %49 : vector<4x8x8xf32>
    %cst_18 = arith.constant dense<0.000000e+00> : vector<4x8xf32>
    %51 = vector.multi_reduction <add>, %50, %cst_18 [2] : vector<4x8x8xf32> to vector<4x8xf32>
    %52 = vector.shape_cast %51 : vector<4x8xf32> to vector<4x8x1xf32>
    %53 = tpu.reciprocal %52 {approx = true} : vector<4x8x1xf32> -> vector<4x8x1xf32>
    %54 = vector.broadcast %53 : vector<4x8x1xf32> to vector<4x8x8xf32>
    %55 = arith.mulf %50, %54 : vector<4x8x8xf32>
    "tpu.trace_start"() <{level = 10 : i32, message = "bqk,bkd->bqd"}> : () -> ()
    %cst_19 = arith.constant dense<0.000000e+00> : vector<4x8x8xf32>
    %56 = tpu.matmul %55, %44, %cst_19 {dimension_numbers = #tpu.dot_dimension_numbers<[2], [1], [1], [2], [0, 0, 0, 1, 1, 2], [0], [0]>} : vector<4x8x8xf32>, vector<4x8x8xf32>, vector<4x8x8xf32> -> vector<4x8x8xf32>
    "tpu.trace_stop"() : () -> ()
    %57 = vector.shape_cast %56 : vector<4x8x8xf32> to vector<1x4x8x8xf32>
    %58 = tpu.transpose %57, [0, 2, 1, 3] : vector<1x4x8x8xf32> -> vector<1x8x4x8xf32>
    %59 = vector.shape_cast %58 : vector<1x8x4x8xf32> to vector<8x32xf32>
    %c0_20 = arith.constant 0 : index
    %c0_21 = arith.constant 0 : index
    %60 = vector.load %arg6[%c0_20, %c0_21] : memref<32x32xf32, #tpu.memory_space<vmem>>, vector<32x32xf32>
    %cst_22 = arith.constant dense<0.000000e+00> : vector<8x32xf32>
    %61 = tpu.matmul %59, %60, %cst_22 {dimension_numbers = #tpu.dot_dimension_numbers<[1], [0], [0], [1], [0, 0, 1, 1], [], []>} : vector<8x32xf32>, vector<32x32xf32>, vector<8x32xf32> -> vector<8x32xf32>
    %62 = arith.addf %1, %61 : vector<8x32xf32>
    %c0_23 = arith.constant 0 : index
    %c0_24 = arith.constant 0 : index
    %63 = vector.load %arg7[%c0_23, %c0_24] : memref<1x32xf32, #tpu.memory_space<vmem>>, vector<1x32xf32>
    %64 = vector.broadcast %63 : vector<1x32xf32> to vector<8x32xf32>
    %65 = arith.addf %62, %64 : vector<8x32xf32>
    %c0_25 = arith.constant 0 : index
    %c0_26 = arith.constant 0 : index
    %66 = vector.load %arg8[%c0_25, %c0_26] : memref<1x32xf32, #tpu.memory_space<vmem>>, vector<1x32xf32>
    %c0_27 = arith.constant 0 : index
    %c0_28 = arith.constant 0 : index
    %67 = vector.load %arg9[%c0_27, %c0_28] : memref<1x32xf32, #tpu.memory_space<vmem>>, vector<1x32xf32>
    %cst_29 = arith.constant dense<0.000000e+00> : vector<8xf32>
    %68 = vector.multi_reduction <add>, %65, %cst_29 [1] : vector<8x32xf32> to vector<8xf32>
    %69 = vector.shape_cast %68 : vector<8xf32> to vector<8x1xf32>
    %cst_30 = arith.constant 3.200000e+01 : f32
    %70 = vector.broadcast %cst_30 : f32 to vector<8x1xf32>
    %71 = arith.divf %69, %70 : vector<8x1xf32>
    %72 = vector.broadcast %71 : vector<8x1xf32> to vector<8x32xf32>
    %73 = arith.subf %65, %72 : vector<8x32xf32>
    %74 = arith.mulf %73, %73 : vector<8x32xf32>
    %cst_31 = arith.constant dense<0.000000e+00> : vector<8xf32>
    %75 = vector.multi_reduction <add>, %74, %cst_31 [1] : vector<8x32xf32> to vector<8xf32>
    %76 = vector.shape_cast %75 : vector<8xf32> to vector<8x1xf32>
    %cst_32 = arith.constant 3.200000e+01 : f32
    %77 = vector.broadcast %cst_32 : f32 to vector<8x1xf32>
    %78 = arith.divf %76, %77 : vector<8x1xf32>
    %79 = vector.broadcast %71 : vector<8x1xf32> to vector<8x32xf32>
    %80 = arith.subf %65, %79 : vector<8x32xf32>
    %cst_33 = arith.constant 9.99999974E-6 : f32
    %81 = vector.broadcast %cst_33 : f32 to vector<8x1xf32>
    %82 = arith.addf %78, %81 : vector<8x1xf32>
    %83 = math.rsqrt %82 : vector<8x1xf32>
    %84 = vector.broadcast %83 : vector<8x1xf32> to vector<8x32xf32>
    %85 = arith.mulf %80, %84 : vector<8x32xf32>
    %86 = vector.broadcast %66 : vector<1x32xf32> to vector<8x32xf32>
    %87 = arith.mulf %85, %86 : vector<8x32xf32>
    %88 = vector.broadcast %67 : vector<1x32xf32> to vector<8x32xf32>
    %89 = arith.addf %87, %88 : vector<8x32xf32>
    %c0_34 = arith.constant 0 : index
    %c0_35 = arith.constant 0 : index
    %90 = vector.load %arg10[%c0_34, %c0_35] : memref<32x32xf32, #tpu.memory_space<vmem>>, vector<32x32xf32>
    %cst_36 = arith.constant dense<0.000000e+00> : vector<8x32xf32>
    %91 = tpu.matmul %89, %90, %cst_36 {dimension_numbers = #tpu.dot_dimension_numbers<[1], [0], [0], [1], [0, 0, 1, 1], [], []>} : vector<8x32xf32>, vector<32x32xf32>, vector<8x32xf32> -> vector<8x32xf32>
    %c0_37 = arith.constant 0 : index
    %c0_38 = arith.constant 0 : index
    %92 = vector.load %arg11[%c0_37, %c0_38] : memref<1x32xf32, #tpu.memory_space<vmem>>, vector<1x32xf32>
    %93 = vector.broadcast %92 : vector<1x32xf32> to vector<8x32xf32>
    %94 = arith.addf %91, %93 : vector<8x32xf32>
    %cst_39 = arith.constant 0.000000e+00 : f32
    %95 = vector.broadcast %cst_39 : f32 to vector<8x32xf32>
    %96 = arith.maximumf %94, %95 : vector<8x32xf32>
    %c0_40 = arith.constant 0 : index
    %c0_41 = arith.constant 0 : index
    %97 = vector.load %arg12[%c0_40, %c0_41] : memref<32x32xf32, #tpu.memory_space<vmem>>, vector<32x32xf32>
    %cst_42 = arith.constant dense<0.000000e+00> : vector<8x32xf32>
    %98 = tpu.matmul %96, %97, %cst_42 {dimension_numbers = #tpu.dot_dimension_numbers<[1], [0], [0], [1], [0, 0, 1, 1], [], []>} : vector<8x32xf32>, vector<32x32xf32>, vector<8x32xf32> -> vector<8x32xf32>
    %99 = arith.addf %65, %98 : vector<8x32xf32>
    %c0_43 = arith.constant 0 : index
    %c0_44 = arith.constant 0 : index
    %100 = vector.load %arg13[%c0_43, %c0_44] : memref<1x32xf32, #tpu.memory_space<vmem>>, vector<1x32xf32>
    %101 = vector.broadcast %100 : vector<1x32xf32> to vector<8x32xf32>
    %102 = arith.addf %99, %101 : vector<8x32xf32>
    %c0_45 = arith.constant 0 : index
    %c0_46 = arith.constant 0 : index
    %103 = vector.load %arg14[%c0_45, %c0_46] : memref<1x32xf32, #tpu.memory_space<vmem>>, vector<1x32xf32>
    %c0_47 = arith.constant 0 : index
    %c0_48 = arith.constant 0 : index
    %104 = vector.load %arg15[%c0_47, %c0_48] : memref<1x32xf32, #tpu.memory_space<vmem>>, vector<1x32xf32>
    %cst_49 = arith.constant dense<0.000000e+00> : vector<8xf32>
    %105 = vector.multi_reduction <add>, %102, %cst_49 [1] : vector<8x32xf32> to vector<8xf32>
    %106 = vector.shape_cast %105 : vector<8xf32> to vector<8x1xf32>
    %cst_50 = arith.constant 3.200000e+01 : f32
    %107 = vector.broadcast %cst_50 : f32 to vector<8x1xf32>
    %108 = arith.divf %106, %107 : vector<8x1xf32>
    %109 = vector.broadcast %108 : vector<8x1xf32> to vector<8x32xf32>
    %110 = arith.subf %102, %109 : vector<8x32xf32>
    %111 = arith.mulf %110, %110 : vector<8x32xf32>
    %cst_51 = arith.constant dense<0.000000e+00> : vector<8xf32>
    %112 = vector.multi_reduction <add>, %111, %cst_51 [1] : vector<8x32xf32> to vector<8xf32>
    %113 = vector.shape_cast %112 : vector<8xf32> to vector<8x1xf32>
    %cst_52 = arith.constant 3.200000e+01 : f32
    %114 = vector.broadcast %cst_52 : f32 to vector<8x1xf32>
    %115 = arith.divf %113, %114 : vector<8x1xf32>
    %116 = vector.broadcast %108 : vector<8x1xf32> to vector<8x32xf32>
    %117 = arith.subf %102, %116 : vector<8x32xf32>
    %cst_53 = arith.constant 9.99999974E-6 : f32
    %118 = vector.broadcast %cst_53 : f32 to vector<8x1xf32>
    %119 = arith.addf %115, %118 : vector<8x1xf32>
    %120 = math.rsqrt %119 : vector<8x1xf32>
    %121 = vector.broadcast %120 : vector<8x1xf32> to vector<8x32xf32>
    %122 = arith.mulf %117, %121 : vector<8x32xf32>
    %123 = vector.broadcast %103 : vector<1x32xf32> to vector<8x32xf32>
    %124 = arith.mulf %122, %123 : vector<8x32xf32>
    %125 = vector.broadcast %104 : vector<1x32xf32> to vector<8x32xf32>
    %126 = arith.addf %124, %125 : vector<8x32xf32>
    %127 = vector.shape_cast %126 : vector<8x32xf32> to vector<1x8x32xf32>
    %c0_54 = arith.constant 0 : index
    %c0_55 = arith.constant 0 : index
    %c0_56 = arith.constant 0 : index
    %128 = vector.load %arg16[%c0_54, %c0_55, %c0_56] : memref<1x8x32xf32, #tpu.memory_space<vmem>>, vector<1x8x32xf32>
    tpu.vector_store %arg16[%c0_54, %c0_55, %c0_56], %127 {strides = array<i32>} : memref<1x8x32xf32, #tpu.memory_space<vmem>>, vector<1x8x32xf32>,
    return
  }
  func.func @transform_0(%arg0: i32) -> (i32, i32, i32) {
    %c0_i32 = arith.constant 0 : i32
    %c0_i32_0 = arith.constant 0 : i32
    %c0_i32_1 = arith.constant 0 : i32
    return %arg0, %c0_i32, %c0_i32_0 : i32, i32, i32
  }
  func.func @transform_1(%arg0: i32) -> (i32, i32) {
    %c0_i32 = arith.constant 0 : i32
    %c0_i32_0 = arith.constant 0 : i32
    %c0_i32_1 = arith.constant 0 : i32
    return %c0_i32, %c0_i32_0 : i32, i32
  }
  func.func @transform_2(%arg0: i32) -> (i32, i32) {
    %c0_i32 = arith.constant 0 : i32
    %c0_i32_0 = arith.constant 0 : i32
    %c0_i32_1 = arith.constant 0 : i32
    return %c0_i32, %c0_i32_0 : i32, i32
  }
  func.func @transform_3(%arg0: i32) -> (i32, i32) {
    %c0_i32 = arith.constant 0 : i32
    %c0_i32_0 = arith.constant 0 : i32
    %c0_i32_1 = arith.constant 0 : i32
    return %c0_i32, %c0_i32_0 : i32, i32
  }
  func.func @transform_4(%arg0: i32) -> (i32, i32) {
    %c0_i32 = arith.constant 0 : i32
    %c0_i32_0 = arith.constant 0 : i32
    %c0_i32_1 = arith.constant 0 : i32
    return %c0_i32, %c0_i32_0 : i32, i32
  }
  func.func @transform_5(%arg0: i32) -> (i32, i32) {
    %c0_i32 = arith.constant 0 : i32
    %c0_i32_0 = arith.constant 0 : i32
    %c0_i32_1 = arith.constant 0 : i32
    return %c0_i32, %c0_i32_0 : i32, i32
  }
  func.func @transform_6(%arg0: i32) -> (i32, i32) {
    %c0_i32 = arith.constant 0 : i32
    %c0_i32_0 = arith.constant 0 : i32
    %c0_i32_1 = arith.constant 0 : i32
    return %c0_i32, %c0_i32_0 : i32, i32
  }
  func.func @transform_7(%arg0: i32) -> (i32, i32) {
    %c0_i32 = arith.constant 0 : i32
    %c0_i32_0 = arith.constant 0 : i32
    %c0_i32_1 = arith.constant 0 : i32
    return %c0_i32, %c0_i32_0 : i32, i32
  }
  func.func @transform_8(%arg0: i32) -> (i32, i32) {
    %c0_i32 = arith.constant 0 : i32
    %c0_i32_0 = arith.constant 0 : i32
    %c0_i32_1 = arith.constant 0 : i32
    return %c0_i32, %c0_i32_0 : i32, i32
  }
  func.func @transform_9(%arg0: i32) -> (i32, i32) {
    %c0_i32 = arith.constant 0 : i32
    %c0_i32_0 = arith.constant 0 : i32
    %c0_i32_1 = arith.constant 0 : i32
    return %c0_i32, %c0_i32_0 : i32, i32
  }
  func.func @transform_10(%arg0: i32) -> (i32, i32) {
    %c0_i32 = arith.constant 0 : i32
    %c0_i32_0 = arith.constant 0 : i32
    %c0_i32_1 = arith.constant 0 : i32
    return %c0_i32, %c0_i32_0 : i32, i32
  }
  func.func @transform_11(%arg0: i32) -> (i32, i32) {
    %c0_i32 = arith.constant 0 : i32
    %c0_i32_0 = arith.constant 0 : i32
    %c0_i32_1 = arith.constant 0 : i32
    return %c0_i32, %c0_i32_0 : i32, i32
  }
  func.func @transform_12(%arg0: i32) -> (i32, i32) {
    %c0_i32 = arith.constant 0 : i32
    %c0_i32_0 = arith.constant 0 : i32
    %c0_i32_1 = arith.constant 0 : i32
    return %c0_i32, %c0_i32_0 : i32, i32
  }
  func.func @transform_13(%arg0: i32) -> (i32, i32) {
    %c0_i32 = arith.constant 0 : i32
    %c0_i32_0 = arith.constant 0 : i32
    %c0_i32_1 = arith.constant 0 : i32
    return %c0_i32, %c0_i32_0 : i32, i32
  }
  func.func @transform_14(%arg0: i32) -> (i32, i32) {
    %c0_i32 = arith.constant 0 : i32
    %c0_i32_0 = arith.constant 0 : i32
    %c0_i32_1 = arith.constant 0 : i32
    return %c0_i32, %c0_i32_0 : i32, i32
  }
  func.func @transform_15(%arg0: i32) -> (i32, i32, i32) {
    %c0_i32 = arith.constant 0 : i32
    %c0_i32_0 = arith.constant 0 : i32
    %c0_i32_1 = arith.constant 0 : i32
    return %arg0, %c0_i32, %c0_i32_0 : i32, i32, i32
  }
}

</mosaic_0001>

<bundles_post_ra>
// kernel: tpu_custom_call.1
= control target key start
LH: loop header
LB: loop body
LE: loop exit
PB: predicated region body
PF: predicated region fallthrough
CT: control target
= control target key end

     0   :  { %s3771_s0 = inlined_call_operand.hbm [shape: f32[2,8,32], index: 0, kind: input, shape index: {}]   ;;  %s3772_s1 = inlined_call_operand.vmem [shape: f32[1,32], index: 1, kind: input, shape index: {}]   ;;  %s3773_s2 = inlined_call_operand.vmem [shape: f32[1,32], index: 2, kind: input, shape index: {}]   ;;  %s3774_s3 = inlined_call_operand.hbm [shape: f32[32,96], index: 3, kind: input, shape index: {}]   ;;  %s3775_s4 = inlined_call_operand.hbm [shape: f32[1,96], index: 4, kind: input, shape index: {}]   ;;  %s3776_s5 = inlined_call_operand.hbm [shape: f32[32,32], index: 5, kind: input, shape index: {}]   ;;  %s3777_s6 = inlined_call_operand.hbm [shape: f32[1,32], index: 6, kind: input, shape index: {}]   ;;  %s3778_s7 = inlined_call_operand.hbm [shape: f32[1,32], index: 7, kind: input, shape index: {}]   ;;  %s3779_s8 = inlined_call_operand.hbm [shape: f32[1,32], index: 8, kind: input, shape index: {}]   ;;  %s3780_s9 = inlined_call_operand.vmem [shape: f32[32,32], index: 9, kind: input, shape index: {}]   ;;  %s3781_s10 = inlined_call_operand.vmem [shape: f32[1,32], index: 10, kind: input, shape index: {}]   ;;  %s3782_s11 = inlined_call_operand.hbm [shape: f32[32,32], index: 11, kind: input, shape index: {}]   ;;  %s3783_s12 = inlined_call_operand.vmem [shape: f32[1,32], index: 12, kind: input, shape index: {}]   ;;  %s3784_s13 = inlined_call_operand.vmem [shape: f32[1,32], index: 13, kind: input, shape index: {}]   ;;  %s3785_s14 = inlined_call_operand.vmem [shape: f32[1,32], index: 14, kind: input, shape index: {}]   ;;  %s3786_s15 = inlined_call_operand.hbm [shape: f32[2,8,32], index: 15, kind: output, shape index: {}]  }
   0x1   :  { %3793 = sst [smem:[#allocation23_spill]] %s3771_s0 }
   0x2   :  { %3794 = sst [smem:[#allocation24_spill]] %s3772_s1 }
   0x3   :  { %3795 = sst [smem:[#allocation25_spill]] %s3773_s2 }
   0x4   :  { %3796 = sst [smem:[#allocation26_spill]] %s3774_s3 }
   0x5   :  { %3797 = sst [smem:[#allocation27_spill]] %s3780_s9 }
   0x6   :  { %3798 = sst [smem:[#allocation28_spill]] %s3781_s10 }
   0x7   :  { %3799 = sst [smem:[#allocation29_spill]] %s3783_s12 }
   0x8   :  { %3800 = sst [smem:[#allocation30_spill]] %s3784_s13 }
   0x9   :  { %3801 = sst [smem:[#allocation31_spill]] %s3785_s14 }
   0xa   :  { %3802 = sst [smem:[#allocation32_spill]] %s3786_s15 }
   0xb   :  { %20 = vsyncpa [#allocation3], 0 }
   0xc   :  { %22 = vsyncpa [#allocation3 + $0x1], 0 }
   0xd   :  { %23 = vsyncpa [#allocation6], 0 }
   0xe   :  { %24 = vsyncpa [#allocation9], 0 }
   0xf   :  { %25 = vsyncpa [#allocation12], 0 }
  0x10   :  { %26 = vsyncpa [#allocation15], 0 }
  0x11   :  { %27 = vsyncpa [#allocation4], 0 }
  0x12   :  { %29 = vsyncpa [#allocation4 + $0x1], 0  ;;  %s3199_s18 = smov 0   ;;  %s3201_s19 = smov 0  }
  0x13   :  { %s3203_s20 = smov 0   ;;  %s3205_s21 = smov 0  }
  0x14 LB: > { %s3095_s22 = smov [#allocation5]   ;;  %s3220_s24 = sadd.s32 4294967295, %s3093_s21   ;;  %s3093_s21 = sphi %s3205_s21, %s3837_s21   ;;  %s3089_s20 = sphi %s3203_s20, %s3836_s20   ;;  %s3085_s19 = sphi %s3201_s19, %s3835_s19   ;;  %s3081_s18 = sphi %s3199_s18, %s3834_s18  }
  0x15   : > { %s404_s23 = sshll.u32 %s3095_s22, 4  ;;  %p2428_p0 = scmp.ge.s32.totalorder %s3093_s21, 1  ;;  %s3225_s23 = int_to_ptr.vmem [resolvable:$true] %s404_s23 }
  0x16   : > { %p3790_p1 = scmp.eq.s32.totalorder %s3220_s24, 0  ;;  %p386_p2 = scmp.lt.s32.totalorder %s3093_s21, 3 }
  0x17   : > { %s3096_s26 = smov [#allocation8]   ;;  %s3097_s29 = smov [#allocation11]  }
  0x18   : > { %p3227_p3 = pnand %p2428_p0, %p386_p2  ;;  %s428_s27 = sshll.u32 %s3096_s26, 4  ;;  %s3240_s27 = int_to_ptr.vmem [resolvable:$true] %s428_s27 }
  0x19   : > { %s453_s30 = sshll.u32 %s3097_s29, 4  ;;  %s3805_s3 = sld [smem:[#allocation26_spill]]  ;;  %s3242_s30 = int_to_ptr.vmem [resolvable:$true] %s453_s30 }
  0x1a   : > { %s3803_s25 = scalar_select %p3227_p3, 1, 0 }
  0x1b   : > { %p2663_p5 = pneg %p3227_p3 }
  0x1d   : > { %p3236_p6 = pnand %p2663_p5, %p3790_p1 }
  0x1f   : > { %s2785_s22 = scalar_lea.hbm %s3805_s3, 512  ;;  %p3252_p8 = pneg %p3236_p6 }
  0x20   : > { %p2786_p7 = scmp.ne.s32.totalorder %s3805_s3, %s2785_s22  ;;  %p2792_p11 = scmp.lt.u32.totalorder %s2785_s22, %s3805_s3 }
  0x22   : > { %p2788_p9 = pnand %p3252_p8, %p2786_p7 }
  0x24   : > { %p2789_p10 = pneg %p2788_p9 }
  0x26   : > { %p2794_p12 = pnand %p2792_p11, %p2789_p10 }
  0x28   : > { %2797 = shalt.err (!%p2794_p12)
}
  0x29   : > { %s2798_s14 = scalar_lea.vmem %s3225_s23, 512  ;;  %p2806_p5 = scmp.lt.s32.totalorder %s3225_s23, %s3225_s23 }
  0x2a   : > { %p2799_p13 = scmp.ne.s32.totalorder %s3225_s23, %s2798_s14  ;;  %p2807_p4 = scmp.lt.s32.totalorder %s2798_s14, %s2798_s14 }
  0x2c   : > { %p2801_p0 = pnand %p2799_p13, %p3252_p8  ;;  %p2808_p7 = por %p2807_p4, %p2806_p5 }
  0x2e   : > { %p2802_p2 = pneg %p2801_p0 }
  0x30   : > { %p2809_p9 = pnand %p2808_p7, %p2802_p2 }
  0x32   : > { %2812 = shalt.err (!%p2809_p9)
}
  0x33   : > { %s3789_s15 = smov 128   ;;  %s3099_s13 = smov 8  }
  0x34   : > { %2666 = dma.hbm_to_vmem [thread:$0]  (!%p3236_p6), %s3805_s3, 512, %s3225_s23, [#allocation6], %s3789_s15, %s3789_s15, %s3099_s13  }
  0x35   : > { %s2813_s14 = scalar_lea.hbm %s3776_s5, 512 }
  0x36   : > { %p2814_p4 = scmp.ne.s32.totalorder %s3776_s5, %s2813_s14  ;;  %p2820_p12 = scmp.lt.u32.totalorder %s2813_s14, %s3776_s5 }
  0x38   : > { %p2816_p10 = pnand %p2814_p4, %p3252_p8 }
  0x3a   : > { %p2817_p11 = pneg %p2816_p10 }
  0x3c   : > { %p2822_p13 = pnand %p2820_p12, %p2817_p11 }
  0x3e   : > { %2825 = shalt.err (!%p2822_p13)
}
  0x3f   : > { %s2826_s23 = scalar_lea.vmem %s3240_s27, 512  ;;  %p2834_p7 = scmp.lt.s32.totalorder %s3240_s27, %s3240_s27 }
  0x40   : > { %p2827_p0 = scmp.ne.s32.totalorder %s3240_s27, %s2826_s23  ;;  %p2835_p9 = scmp.lt.s32.totalorder %s2826_s23, %s2826_s23 }
  0x42   : > { %p2829_p2 = pnand %p2827_p0, %p3252_p8  ;;  %p2836_p4 = por %p2835_p9, %p2834_p7 }
  0x44   : > { %p2830_p5 = pneg %p2829_p2 }
  0x46   : > { %p2837_p10 = pnand %p2836_p4, %p2830_p5 }
  0x48   : > { %2840 = shalt.err (!%p2837_p10)
}
  0x49   : > { %2672 = dma.hbm_to_vmem [thread:$0]  (!%p3236_p6), %s3776_s5, 512, %s3240_s27, [#allocation9], %s3789_s15, %s3789_s15, %s3099_s13  }
  0x4a   : > { %s2841_s16 = scalar_lea.hbm %s3778_s7, 16 }
  0x4b   : > { %p2842_p11 = scmp.ne.s32.totalorder %s3778_s7, %s2841_s16  ;;  %p2848_p0 = scmp.lt.u32.totalorder %s2841_s16, %s3778_s7 }
  0x4d   : > { %p2844_p12 = pnand %p2842_p11, %p3252_p8 }
  0x4f   : > { %p2845_p13 = pneg %p2844_p12 }
  0x51   : > { %p2850_p2 = pnand %p2848_p0, %p2845_p13 }
  0x53   : > { %2853 = shalt.err (!%p2850_p2)
}
  0x54   : > { %s2854_s27 = scalar_lea.vmem %s3242_s30, 16  ;;  %s2861_s23 = scalar_lea.vmem %s3242_s30, 32 }
  0x55   : > { %p2855_p5 = scmp.ne.s32.totalorder %s3242_s30, %s2854_s27  ;;  %p2862_p4 = scmp.lt.s32.totalorder %s3242_s30, %s3242_s30 }
  0x56   : > { %p2863_p10 = scmp.lt.s32.totalorder %s2861_s23, %s2854_s27 }
  0x57   : > { %p2857_p7 = pnand %p2855_p5, %p3252_p8 }
  0x58   : > { %p2864_p11 = por %p2863_p10, %p2862_p4 }
  0x59   : > { %p2858_p9 = pneg %p2857_p7 }
  0x5b   : > { %p2865_p12 = pnand %p2864_p11, %p2858_p9 }
  0x5d   : > { %2868 = shalt.err (!%p2865_p12)
}
  0x5e   : > { %2678 = dma.hbm_to_vmem [thread:$0]  (!%p3236_p6), %s3778_s7, 16, %s3242_s30, [#allocation12]  }
  0x5f   : > { %s3100_s10 = smov [#allocation7]   ;;  %s3101_s16 = smov [#allocation10]  }
  0x60   : > { %s418_s12 = sshll.u32 %s3100_s10, 4  ;;  %s442_s17 = sshll.u32 %s3101_s16, 4  ;;  %s419_s12 = int_to_ptr.vmem [resolvable:$true] %s418_s12  ;;  %s443_s17 = int_to_ptr.vmem [resolvable:$true] %s442_s17 }
  0x61   : > { %s2869_s14 = scalar_lea.hbm %s3775_s4, 16 }
  0x62   : > { %p2870_p13 = scmp.ne.s32.totalorder %s3775_s4, %s2869_s14  ;;  %p2876_p5 = scmp.lt.u32.totalorder %s2869_s14, %s3775_s4 }
  0x64   : > { %p2872_p0 = pnand %p2870_p13, %p3252_p8 }
  0x66   : > { %p2873_p2 = pneg %p2872_p0 }
  0x68   : > { %p2878_p7 = pnand %p2876_p5, %p2873_p2 }
  0x6a   : > { %2881 = shalt.err (!%p2878_p7)
}
  0x6b   : > { %s2882_s30 = scalar_lea.vmem %s419_s12, 16  ;;  %s2889_s9 = scalar_lea.vmem %s419_s12, 32 }
  0x6c   : > { %p2883_p9 = scmp.ne.s32.totalorder %s419_s12, %s2882_s30  ;;  %p2890_p11 = scmp.lt.s32.totalorder %s419_s12, %s419_s12 }
  0x6d   : > { %p2891_p12 = scmp.lt.s32.totalorder %s2889_s9, %s2882_s30 }
  0x6e   : > { %p2885_p4 = pnand %p2883_p9, %p3252_p8 }
  0x6f   : > { %p2892_p1 = por %p2891_p12, %p2890_p11 }
  0x70   : > { %p2886_p10 = pneg %p2885_p4 }
  0x72   : > { %p2893_p3 = pnand %p2892_p1, %p2886_p10 }
  0x74   : > { %2896 = shalt.err (!%p2893_p3)
}
  0x75   : > { %2669 = dma.hbm_to_vmem [thread:$0]  (!%p3236_p6), %s3775_s4, 16, %s419_s12, [#allocation6]  }
  0x76   : > { %s2897_s29 = scalar_lea.hbm %s3777_s6, 16 }
  0x77   : > { %p2898_p13 = scmp.ne.s32.totalorder %s3777_s6, %s2897_s29  ;;  %p2904_p3 = scmp.lt.u32.totalorder %s2897_s29, %s3777_s6 }
  0x79   : > { %p2900_p0 = pnand %p2898_p13, %p3252_p8 }
  0x7b   : > { %p2901_p1 = pneg %p2900_p0 }
  0x7d   : > { %p2906_p2 = pnand %p2904_p3, %p2901_p1 }
  0x7f   : > { %2909 = shalt.err (!%p2906_p2)
}
  0x80   : > { %s2910_s30 = scalar_lea.vmem %s443_s17, 16  ;;  %s2917_s12 = scalar_lea.vmem %s443_s17, 32 }
  0x81   : > { %p2911_p5 = scmp.ne.s32.totalorder %s443_s17, %s2910_s30  ;;  %p2918_p4 = scmp.lt.s32.totalorder %s443_s17, %s443_s17 }
  0x82   : > { %p2919_p10 = scmp.lt.s32.totalorder %s2917_s12, %s2910_s30 }
  0x83   : > { %p2913_p7 = pnand %p2911_p5, %p3252_p8 }
  0x84   : > { %p2920_p11 = por %p2919_p10, %p2918_p4 }
  0x85   : > { %p2914_p9 = pneg %p2913_p7 }
  0x87   : > { %p2921_p12 = pnand %p2920_p11, %p2914_p9 }
  0x89   : > { %2924 = shalt.err (!%p2921_p12)
}
  0x8a   : > { %2675 = dma.hbm_to_vmem [thread:$0]  (!%p3236_p6), %s3777_s6, 16, %s443_s17, [#allocation9]  }
  0x8b   : > { %s3102_s16 = smov [#allocation13]   ;;  %s3103_s22 = smov [#allocation14]  }
  0x8c   : > { %s464_s15 = sshll.u32 %s3102_s16, 4  ;;  %s480_s29 = sshll.u32 %s3103_s22, 4  ;;  %s465_s15 = int_to_ptr.vmem [resolvable:$true] %s464_s15  ;;  %s481_s29 = int_to_ptr.vmem [resolvable:$true] %s480_s29 }
  0x8d   : > { %s2925_s23 = scalar_lea.hbm %s3779_s8, 16 }
  0x8e   : > { %p2926_p13 = scmp.ne.s32.totalorder %s3779_s8, %s2925_s23  ;;  %p2932_p3 = scmp.lt.u32.totalorder %s2925_s23, %s3779_s8 }
  0x90   : > { %p2928_p0 = pnand %p2926_p13, %p3252_p8 }
  0x92   : > { %p2929_p1 = pneg %p2928_p0 }
  0x94   : > { %p2934_p2 = pnand %p2932_p3, %p2929_p1 }
  0x96   : > { %2937 = shalt.err (!%p2934_p2)
}
  0x97   : > { %s2938_s17 = scalar_lea.vmem %s465_s15, 16  ;;  %s2945_s10 = scalar_lea.vmem %s465_s15, 32 }
  0x98   : > { %p2939_p5 = scmp.ne.s32.totalorder %s465_s15, %s2938_s17  ;;  %p2946_p4 = scmp.lt.s32.totalorder %s465_s15, %s465_s15 }
  0x99   : > { %p2947_p10 = scmp.lt.s32.totalorder %s2945_s10, %s2938_s17 }
  0x9a   : > { %p2941_p7 = pnand %p2939_p5, %p3252_p8 }
  0x9b   : > { %p2948_p11 = por %p2947_p10, %p2946_p4 }
  0x9c   : > { %p2942_p9 = pneg %p2941_p7 }
  0x9e   : > { %p2949_p12 = pnand %p2948_p11, %p2942_p9 }
  0xa0   : > { %2952 = shalt.err (!%p2949_p12)
}
  0xa1   : > { %2681 = dma.hbm_to_vmem [thread:$0]  (!%p3236_p6), %s3779_s8, 16, %s465_s15, [#allocation12]  }
  0xa2   : > { %s2953_s23 = scalar_lea.hbm %s3782_s11, 512 }
  0xa3   : > { %p2954_p13 = scmp.ne.s32.totalorder %s3782_s11, %s2953_s23  ;;  %p2960_p3 = scmp.lt.u32.totalorder %s2953_s23, %s3782_s11 }
  0xa5   : > { %p2956_p0 = pnand %p2954_p13, %p3252_p8 }
  0xa7   : > { %p2957_p1 = pneg %p2956_p0 }
  0xa9   : > { %p2962_p2 = pnand %p2960_p3, %p2957_p1 }
  0xab   : > { %2965 = shalt.err (!%p2962_p2)
}
  0xac   : > { %s2966_s17 = scalar_lea.vmem %s481_s29, 512  ;;  %p2974_p4 = scmp.lt.s32.totalorder %s481_s29, %s481_s29 }
  0xad   : > { %p2967_p5 = scmp.ne.s32.totalorder %s481_s29, %s2966_s17  ;;  %p2975_p10 = scmp.lt.s32.totalorder %s2966_s17, %s2966_s17 }
  0xaf   : > { %p2969_p7 = pnand %p2967_p5, %p3252_p8  ;;  %p2976_p11 = por %p2975_p10, %p2974_p4 }
  0xb1   : > { %p2970_p9 = pneg %p2969_p7 }
  0xb3   : > { %p2977_p12 = pnand %p2976_p11, %p2970_p9 }
  0xb5   : > { %2980 = shalt.err (!%p2977_p12)
}
  0xb6   : > { %s3807_s15 = smov 128   ;;  %s2427_s28 = sadd.s32 4294967294, %s3093_s21  }
  0xb7   : > { %2684 = dma.hbm_to_vmem [thread:$0]  (!%p3236_p6), %s3782_s11, 512, %s481_s29, [#allocation15], %s3807_s15, %s3807_s15, %s3099_s13  }
  0xb8   : > { %s3403_s26 = sadd.s32 1, %s3093_s21   ;;  %s42_s22 = sadd.s32 1, %s3089_s20 }
  0xb9   : > { %s39_s14 = ssub.s32 %s3093_s21, %s3403_s26  ;;  %p49_p8 = scmp.ne.s32.totalorder %s3089_s20, %s3085_s19 }
  0xba   : > { %p40_p13 = scmp.eq.s32.totalorder %s39_s14, 0  ;;  %p50_p0 = scmp.eq.s32.totalorder %s3093_s21, 0 }
  0xbb   : > { %p55_p1 = scmp.ne.s32.totalorder %s3085_s19, %s3081_s18  ;;  %p373_p3 = scmp.eq.s32.totalorder %s3220_s24, 1 }
  0xbc   : > { %s3415_s27 = scalar_select %p40_p13, %s3089_s20, %s42_s22  }
  0xbd   : > { %p51_p2 = por %p50_p0, %p49_p8  ;;  %p3808_p5 = scmp.eq.s32.totalorder %s3220_s24, 0 }
  0xbe   : > { %p3423_p6 = por %p373_p3, %p49_p8  ;;  %p379_p9 = scmp.eq.s32.totalorder %s2427_s28, 1 }
  0xbf   : > { %p3419_p7 = por %p3808_p5, %p55_p1  ;;  %p2700_p4 = scmp.lt.s32.totalorder %s3093_s21, 2 }
  0xc0   : > { %s3810_s13 = scalar_select %p3423_p6, 1, 0 }
  0xc1   : > { %s503_s29 = sand.u32 1, %s3089_s20   ;;  %p3429_p10 = por %p379_p9, %p55_p1 }
  0xc2   : > { %s2437_s30 = sshll.u32 %s503_s29, 3  ;;  %s2438_s12 = sshll.u32 %s3093_s21, 7 }
  0xc3   : > { %s3811_s2 = scalar_select %p3429_p10, 1, 0 }
  0xc4   : > { %s3812_s0 = sld [smem:[#allocation23_spill]]  ;;  %s507_s10 = scalar_lea.vmem [#allocation2], %s2437_s30 }
  0xc5   : > { %s514_s16 = sshll.u32 %s507_s10, 4  ;;  %p3439_p11 = pnand %p2700_p4, %p51_p2  ;;  %s3443_s16 = int_to_ptr.vmem [resolvable:$true] %s514_s16 }
  0xc6   : > { %s504_s22 = scalar_lea.sflag [#allocation3], %s503_s29 }
  0xc7   : > { %p2983_p8 = pneg %p3439_p11 }
  0xca   : > { %s3437_s15 = scalar_lea.hbm %s3812_s0, %s2438_s12  ;;  %s2986_s9 = scalar_lea.hbm %s3812_s0, 256 }
  0xcb   : > { %s2981_s14 = scalar_lea.hbm %s3437_s15, 128  ;;  %p2987_p1 = scmp.lt.u32.totalorder %s3437_s15, %s3812_s0 }
  0xcc   : > { %p2982_p12 = scmp.ne.s32.totalorder %s3437_s15, %s2981_s14  ;;  %p2988_p3 = scmp.lt.u32.totalorder %s2986_s9, %s2981_s14 }
  0xcd   : > { %p2990_p5 = scmp.lt.u32.totalorder %s2981_s14, %s3437_s15 }
  0xce   : > { %p2984_p13 = pnand %p2983_p8, %p2982_p12  ;;  %p2989_p2 = por %p2988_p3, %p2987_p1 }
  0xd0   : > { %p2985_p0 = pneg %p2984_p13  ;;  %p2991_p9 = por %p2990_p5, %p2989_p2 }
  0xd2   : > { %p2992_p4 = pnand %p2991_p9, %p2985_p0 }
  0xd4   : > { %2995 = shalt.err (!%p2992_p4)
}
  0xd5   : > { %s2996_s29 = scalar_lea.vmem %s3443_s16, 128  ;;  %s3104_s12 = smov [#allocation2]  }
  0xd6   : > { %p2997_p12 = scmp.ne.s32.totalorder %s3443_s16, %s2996_s29  ;;  %s3001_s30 = sshll.u32 %s3104_s12, 4  ;;  %s3002_s30 = int_to_ptr.vmem [resolvable:$false] %s3001_s30 }
  0xd7   : > { %s3003_s17 = scalar_lea.vmem %s3002_s30, 256  ;;  %p3004_p6 = scmp.lt.s32.totalorder %s3443_s16, %s3002_s30 }
  0xd8   : > { %p2999_p13 = pnand %p2997_p12, %p2983_p8  ;;  %p3005_p1 = scmp.lt.s32.totalorder %s3003_s17, %s2996_s29 }
  0xda   : > { %p3000_p10 = pneg %p2999_p13  ;;  %p3006_p3 = por %p3005_p1, %p3004_p6 }
  0xdc   : > { %p3007_p2 = pnand %p3006_p3, %p3000_p10 }
  0xde   : > { %3010 = shalt.err (!%p3007_p2)
}
  0xdf   : > { %2688 = dma.hbm_to_vmem [thread:$0]  (!%p3439_p11), %s3437_s15, 128, %s3443_s16, %s504_s22  }
  0xe0   : > { %p3814_p0 = scmp.ne.s32.totalorder %s3803_s25, 0 }
  0xe1   : > { %s3473_s14 = sand.u32 (!%p3814_p0), 1, %s3085_s19  }
  0xe2   : > { %523 = sbr.rel (%p3814_p0) target bundleno = 3223 (0xc97), region = 80  ;;  %s2440_s9 = sshll.u32 (!%p3814_p0), %s3473_s14, 3 }
  0xe3   : > { %s526_s10 = scalar_lea.sflag (!%p3814_p0), [#allocation3], %s3473_s14  ;;  %s529_s29 = scalar_lea.vmem (!%p3814_p0), [#allocation2], %s2440_s9 }
  0xe9   : > { %3056 = dma.done.wait (%p3419_p7), %s526_s10, 128  }
  0xea   : > { %3058 = vsyncadd (%p3419_p7), %s526_s10, 4294967168  ;;  %p3815_p6 = scmp.eq.s32.totalorder %s3220_s24, 0 }
  0xec   : > { %3060 = dma.done.wait (%p3815_p6), [#allocation6], 528   ;;  %p3816_p10 = pmov %p3815_p6 }
  0xed   : > { %p3817_p11 = pmov %p3815_p6 }
  0xee   : > { %3062 = vsyncadd (%p3816_p10), [#allocation6], 4294966768 }
  0xef   : > { %3064 = dma.done.wait (%p3817_p11), [#allocation9], 528   ;;  %p3818_p8 = pmov %p3815_p6 }
  0xf0   : > { %p3819_p5 = pmov %p3815_p6 }
  0xf1   : > { %3066 = vsyncadd (%p3818_p8), [#allocation9], 4294966768 }
  0xf2   : > { %3068 = dma.done.wait (%p3819_p5), [#allocation12], 32   ;;  %p3820_p9 = pmov %p3819_p5 }
  0xf3   : > { %p3821_p7 = pmov %p3819_p5 }
  0xf4   : > { %3070 = vsyncadd (%p3820_p9), [#allocation12], 4294967264 }
  0xf5   : > { %3072 = dma.done.wait (%p3821_p7), [#allocation15], 512   ;;  %p3822_p4 = pmov %p3819_p5 }
  0xf6   : > { %vm607_vm0 = vcmask 261120   ;;  %v3499_v0 = vld [vmem:[%s529_s29] sm:$0xff]  ;;  %v636_v7 = vld [vmem:[#allocation5] sm:$0xff]  ;;  %v637_v8 = vld [vmem:[#allocation5 + $0x8] sm:$0xff]  ;;  %v3105_v10 = vmov 0.0|0.0   ;;  %vm3106_vm1 = vmmov 0   ;;  %v735_v33 = vlaneseq }
  0xf7   : > { %3074 = vsyncadd (%p3822_p4), [#allocation15], 4294966784  ;;  %v608_v1 = vsel %vm607_vm0, %v3499_v0, 0.0  ;;  %v638_v9 = vld [vmem:[#allocation5 + $0x10] sm:$0xff]  ;;  %2607 = vmatprep.subr.bf16.mxu0 %v3105_v10  ;;  %v2608_v11 = vpack.c.bf16 %v637_v8, %v636_v7  ;;  %v639_v12 = vld [vmem:[#allocation5 + $0x18] sm:$0xff]  ;;  %v3107_v13 = vmov 0.0  }
  0xf8   : > { %609 = vadd.xlane.f32.xlu0 %v608_v1  ;;  %2531 = vmatprep.mubr.msk.f32.mxu0 %vm3106_vm1, %v3107_v13  ;;  %v2611_v14 = vpack.c.bf16 %v639_v12, %v638_v9  ;;  %s3823_s1 = sld [smem:[#allocation24_spill]]  ;;  %s3824_s28 = sld [smem:[#allocation25_spill]]  ;;  %v2451_v24 = vld [vmem:[#allocation7] ss:$0 sm:$0xff]  ;;  %v3112_v31 = vmov 1983009808  }
  0xf9   : > { %2534 = vmatprep.subr.mxu1 %v3107_v13  ;;  %2536 = vmatprep.mubr.msk.f32.mxu1 %vm3106_vm1, %v3107_v13  ;;  %s3108_s22 = smov 104   ;;  %s3109_s12 = smov 120   ;;  %v733_v32 = vunpack.c.l.s4 %v3112_v31  ;;  %v736_v35 = vshrl.u32 %v735_v33, 7  ;;  %v3113_v36 = vmov 1934713408   ;;  %vm1166_vm2 = vcmask 64512  }
  0xfa   : > { %2609 = vmatpush3.bf16.msra.mxu0 %v2608_v11  ;;  %s3110_s30 = smov 112   ;;  %s3111_s17 = smov 96   ;;  %v765_v37 = vunpack.c.l.s4 %v3113_v36  ;;  %vm1956_vm3 = vcmask 130048   ;;  %vm1958_vm4 = vcmask 195584  }
  0xfb   : > { %2610 = vmatprep.subr.bf16.mxu0 %v3105_v10  ;;  %v734_v34 = vunpack.c.0.s8 %v733_v32  ;;  %s3114_s10 = smov 64   ;;  %s3115_s29 = smov 16  }
  0xfc   : > { %v766_v43 = vunpack.c.0.s8 %v765_v37  ;;  %s3116_s25 = smov 8   ;;  %s3117_s23 = smov 24  }
  0xfd   : > { %v3541_v40 = vsub.s32 %v734_v34, %v736_v35  ;;  %s3826_s15 = sld [smem:[#allocation28_spill]]  ;;  %s603_s16 = scalar_lea.vmem [#allocation16], %s2440_s9 }
  0xfe   : > { %2612 = vmatpush3.bf16.msra.mxu0 %v2611_v14  ;;  %v2449_v19 = vld [vmem:[%s3823_s1] ss:$0 sm:$0xff]  ;;  %v3551_v49 = vsub.s32 %v766_v43, %v736_v35  ;;  %s3830_s1 = sld [smem:[#allocation32_spill]]  ;;  %p3831_p13 = scmp.ne.s32.totalorder %s3810_s13, 0 }
  0xff   : > { %2554 = vmatprep.subr.mxu0 %v3107_v13  ;;  %v2450_v21 = vld [vmem:[%s3824_s28] ss:$0 sm:$0xff]  ;;  %s3825_s28 = sld [smem:[#allocation27_spill]] }
 0x185   : > { %v610_v2 = vpop.xlane.xlu0 %609 }
 0x186   : > { %v612_v3 = vmul.f32 0.03125, %v610_v2 }
 0x188   : > { %v613_v4 = vsub.f32 %v3499_v0, %v612_v3 }
 0x18a   : > { %v614_v5 = vmul.f32 %v613_v4, %v613_v4 }
 0x18c   : > { %v615_v6 = vsel %vm607_vm0, %v614_v5, 0.0 }
 0x18d   : > { %616 = vadd.xlane.f32.xlu0 %v615_v6 }
 0x21a   : > { %v617_v15 = vpop.xlane.xlu0 %616 }
 0x21b   : > { %v618_v16 = vmul.f32 0.03125, %v617_v15 }
 0x21d   : > { %v619_v17 = vadd.f32 1e-05, %v618_v16 }
 0x21f   : > { %2763 = vrsqrt.f32 %v619_v17 }
 0x229   : > { %v2764_v18 = vpop.eup %2763 }
 0x22a   : > { %v621_v20 = vmul.f32 %v2764_v18, %v613_v4 }
 0x22c   : > { %v628_v22 = vmul.f32 %v2449_v19, %v621_v20 }
 0x22e   : > { %v635_v23 = vadd.f32 %v2450_v21, %v628_v22 }
 0x230   : > { %2532 = vmatmul.mubr.msk.f32.vlgmr.msra.gmra.mrb[0].mxu0 %vm607_vm0, %v635_v23 }
 0x231   : > { %2556 = vmatprep.mubr.msk.f32.mxu0 %vm3106_vm1, %v3107_v13 }
 0x303   : > { %v716_v25 = vpop.f32.mrb[0].mxu0 }
 0x304   : > { %v3522_v26 = vadd.f32 %v2451_v24, %v716_v25  ;;  %v2533_v27 = vpop.f32.mrb[1].mxu0 }
 0x306   : > { %727 = vrot.lane.b32.xlu0 %v3522_v26, %s3108_s22  ;;  %721 = vrot.lane.b32.xlu1 %v3522_v26, %s3109_s12  ;;  %s3827_s12 = sld [smem:[#allocation29_spill]]  ;;  %s2290_s22 = sshll.u32 %s603_s16, 4  ;;  %s3728_s22 = int_to_ptr.vmem [resolvable:$true] %s2290_s22 }
 0x30a   : > { %724 = vrot.lane.b32.xlu1 %v3522_v26, %s3110_s30  ;;  %s2277_s30 = scalar_lea.sflag [#allocation4], %s3473_s14 }
 0x30e   : > { %870 = vrot.lane.b32.xlu1 %v3522_v26, %s3111_s17 }
 0x378   : > { %v3528_v28 = vpop.permute.xlu1 %721  ;;  %v3534_v30 = vpop.permute.xlu0 %727 }
 0x379   : > { %872 = vrot.lane.b32.xlu1 %v3528_v28, %s3111_s17  ;;  %v746_v41 = vcombine.low %v3528_v28, %v3534_v30  ;;  %v747_v42 = vcombine.high %v3528_v28, %v3534_v30 }
 0x37b   : > { %v754_v47 = vrot.slane %v746_v41, %v3541_v40  ;;  %v761_v48 = vrot.slane %v747_v42, %v3541_v40 }
 0x37c   : > { %v3531_v29 = vpop.permute.xlu1 %724 }
 0x37d   : > { %874 = vrot.lane.b32.xlu1 %v3531_v29, %s3111_s17  ;;  %v730_v38 = vcombine.low %v3522_v26, %v3531_v29  ;;  %v731_v39 = vcombine.high %v3522_v26, %v3531_v29 }
 0x37f   : > { %v738_v44 = vrot.slane %v730_v38, %v3541_v40  ;;  %v745_v45 = vrot.slane %v731_v39, %v3541_v40 }
 0x380   : > { %v871_v46 = vpop.permute.xlu1 %870 }
 0x381   : > { %876 = vrot.lane.b32.xlu1 %v3534_v30, %s3111_s17  ;;  %v762_v50 = vcombine.low %v738_v44, %v754_v47  ;;  %v763_v51 = vcombine.high %v738_v44, %v754_v47  ;;  %v778_v52 = vcombine.low %v745_v45, %v761_v48  ;;  %v779_v53 = vcombine.high %v745_v45, %v761_v48  ;;  %s3011_s17 = scalar_lea.vmem %s3728_s22, 128 }
 0x382   : > { %p3012_p12 = scmp.ne.s32.totalorder %s3728_s22, %s3011_s17 }
 0x383   : > { %v770_v55 = vrot.slane %v762_v50, %v3551_v49  ;;  %v777_v56 = vrot.slane %v763_v51, %v3551_v49  ;;  %v786_v57 = vrot.slane %v778_v52, %v3551_v49  ;;  %v793_v58 = vrot.slane %v779_v53, %v3551_v49 }
 0x384   : > { %p3013_p1 = pnand %p3012_p12, %p3831_p13 }
 0x385   : > { %v798_v62 = vcombine.low %v770_v55, %v777_v56  ;;  %v2453_v63 = vcombine.high %v770_v55, %v777_v56  ;;  %v814_v1 = vcombine.low %v786_v57, %v793_v58  ;;  %v2454_v2 = vcombine.high %v786_v57, %v793_v58 }
 0x386   : > { %p3014_p3 = pneg %p3013_p1 }
 0x387   : > { %v805_v11 = vrot.slane %v798_v62, %v3541_v40  ;;  %v813_v12 = vrot.slane %v2453_v63, %v3541_v40  ;;  %v821_v14 = vrot.slane %v814_v1, %v3541_v40  ;;  %v829_v15 = vrot.slane %v2454_v2, %v3541_v40 }
 0x389   : > { %v830_v24 = vcombine.low %v805_v11, %v813_v12  ;;  %v846_v25 = vcombine.low %v821_v14, %v829_v15  ;;  %v831_v45 = vcombine.high %v805_v11, %v813_v12 }
 0x38b   : > { %v838_v38 = vrot.slane %v830_v24, %v3551_v49  ;;  %v854_v39 = vrot.slane %v846_v25, %v3551_v49 }
 0x38d   : > { %v862_v47 = vcombine.low %v838_v38, %v854_v39  ;;  %v863_v52 = vcombine.high %v838_v38, %v854_v39 }
 0x38f   : > { %v866_v53 = vmul.f32 0.35355338, %v862_v47 }
 0x3eb   : > { %v873_v54 = vpop.permute.xlu1 %872 }
 0x3ef   : > { %v875_v59 = vpop.permute.xlu1 %874 }
 0x3f0   : > { %v882_v60 = vcombine.low %v871_v46, %v875_v59  ;;  %v883_v61 = vcombine.high %v871_v46, %v875_v59  ;;  %v847_v46 = vcombine.high %v821_v14, %v829_v15  ;;  %v867_v59 = vmul.f32 0.35355338, %v863_v52 }
 0x3f2   : > { %v890_v6 = vrot.slane %v882_v60, %v3541_v40  ;;  %v897_v7 = vrot.slane %v883_v61, %v3541_v40  ;;  %v861_v55 = vrot.slane %v847_v46, %v3551_v49 }
 0x3f3   : > { %v877_v3 = vpop.permute.xlu1 %876 }
 0x3f4   : > { %v898_v4 = vcombine.low %v873_v54, %v877_v3  ;;  %v899_v5 = vcombine.high %v873_v54, %v877_v3  ;;  %v845_v54 = vrot.slane %v831_v45, %v3551_v49 }
 0x3f6   : > { %v906_v8 = vrot.slane %v898_v4, %v3541_v40  ;;  %v913_v9 = vrot.slane %v899_v5, %v3541_v40  ;;  %v864_v60 = vcombine.low %v845_v54, %v861_v55  ;;  %v865_v63 = vcombine.high %v845_v54, %v861_v55 }
 0x3f8   : > { %v914_v16 = vcombine.low %v890_v6, %v906_v8  ;;  %v915_v17 = vcombine.high %v890_v6, %v906_v8  ;;  %v930_v18 = vcombine.low %v897_v7, %v913_v9  ;;  %v931_v19 = vcombine.high %v897_v7, %v913_v9 }
 0x3f9   : > { %v868_v62 = vmul.f32 0.35355338, %v864_v60  ;;  %v869_v2 = vmul.f32 0.35355338, %v865_v63 }
 0x3fa   : > { %v922_v20 = vrot.slane %v914_v16, %v3551_v49  ;;  %v929_v21 = vrot.slane %v915_v17, %v3551_v49  ;;  %v938_v22 = vrot.slane %v930_v18, %v3551_v49  ;;  %v945_v23 = vrot.slane %v931_v19, %v3551_v49 }
 0x3fc   : > { %v950_v27 = vcombine.low %v922_v20, %v929_v21  ;;  %v2455_v31 = vcombine.high %v922_v20, %v929_v21  ;;  %v966_v32 = vcombine.low %v938_v22, %v945_v23  ;;  %v2456_v33 = vcombine.high %v938_v22, %v945_v23 }
 0x3fe   : > { %v957_v34 = vrot.slane %v950_v27, %v3541_v40  ;;  %v965_v35 = vrot.slane %v2455_v31, %v3541_v40  ;;  %v973_v36 = vrot.slane %v966_v32, %v3541_v40  ;;  %v981_v37 = vrot.slane %v2456_v33, %v3541_v40 }
 0x400   : > { %v982_v41 = vcombine.low %v957_v34, %v965_v35  ;;  %v998_v42 = vcombine.low %v973_v36, %v981_v37  ;;  %v983_v48 = vcombine.high %v957_v34, %v965_v35  ;;  %v999_v50 = vcombine.high %v973_v36, %v981_v37 }
 0x402   : > { %v990_v43 = vrot.slane %v982_v41, %v3551_v49  ;;  %v1006_v44 = vrot.slane %v998_v42, %v3551_v49  ;;  %v997_v57 = vrot.slane %v983_v48, %v3551_v49  ;;  %v1013_v58 = vrot.slane %v999_v50, %v3551_v49 }
 0x404   : > { %v1014_v51 = vcombine.low %v990_v43, %v1006_v44  ;;  %v1015_v56 = vcombine.high %v990_v43, %v1006_v44  ;;  %v1016_v61 = vcombine.low %v997_v57, %v1013_v58  ;;  %v1017_v1 = vcombine.high %v997_v57, %v1013_v58 }
 0x406   : > { %2535 = vmatpush3.xpose.msk.msra.mxu1 %vm1166_vm2, %v1014_v51 }
 0x407   : > { %2539 = vmatprep.subr.mxu1 %v3107_v13 }
 0x409   : > { %2537 = vmatmul.mubr.msk.f32.vlgmr.msra.gmra.mrb[0].mxu1 %vm1166_vm2, %v866_v53 }
 0x40a   : > { %2540 = vmatpush3.xpose.msk.msra.mxu1 %vm1166_vm2, %v1015_v56  ;;  %2541 = vmatprep.mubr.msk.f32.mxu1 %vm3106_vm1, %v3107_v13 }
 0x40b   : > { %2544 = vmatprep.subr.mxu1 %v3107_v13 }
 0x40d   : > { %2542 = vmatmul.mubr.msk.f32.vlgmr.msra.gmra.mrb[2].mxu1 %vm1166_vm2, %v867_v59 }
 0x40e   : > { %2545 = vmatpush3.xpose.msk.msra.mxu1 %vm1166_vm2, %v1016_v61  ;;  %2546 = vmatprep.mubr.msk.f32.mxu1 %vm3106_vm1, %v3107_v13 }
 0x40f   : > { %2549 = vmatprep.subr.mxu1 %v3107_v13 }
 0x411   : > { %2547 = vmatmul.mubr.msk.f32.vlgmr.msra.gmra.mrb[4].mxu1 %vm1166_vm2, %v868_v62 }
 0x412   : > { %2550 = vmatpush3.xpose.msk.msra.mxu1 %vm1166_vm2, %v1017_v1  ;;  %2551 = vmatprep.mubr.msk.f32.mxu1 %vm3106_vm1, %v3107_v13 }
 0x413   : > { %2559 = vmatprep.subr.mxu1 %v3107_v13 }
 0x415   : > { %2552 = vmatmul.mubr.msk.f32.vlgmr.msra.gmra.mrb[6].mxu1 %vm1166_vm2, %v869_v2 }
 0x416   : > { %2561 = vmatprep.mubr.msk.f32.mxu1 %vm3106_vm1, %v3107_v13 }
 0x4dc   : > { %v1239_v3 = vpop.f32.mrb[0].mxu1 }
 0x4dd   : > { %v2538_v4 = vpop.f32.mrb[1].mxu1  ;;  %v1471_v5 = vsel %vm1166_vm2, %v1239_v3, -inf }
 0x4de   : > { %1472 = vmax.xlane.f32.xlu1 %v1471_v5 }
 0x4e0   : > { %v1315_v6 = vpop.f32.mrb[2].mxu1 }
 0x4e1   : > { %v2543_v7 = vpop.f32.mrb[3].mxu1  ;;  %v1474_v8 = vsel %vm1166_vm2, %v1315_v6, -inf }
 0x4e2   : > { %1475 = vmax.xlane.f32.xlu0 %v1474_v8 }
 0x4e4   : > { %v1391_v9 = vpop.f32.mrb[4].mxu1 }
 0x4e5   : > { %v2548_v11 = vpop.f32.mrb[5].mxu1  ;;  %v1477_v12 = vsel %vm1166_vm2, %v1391_v9, -inf }
 0x4e6   : > { %1478 = vmax.xlane.f32.xlu1 %v1477_v12 }
 0x4e8   : > { %v1467_v14 = vpop.f32.mrb[6].mxu1 }
 0x4e9   : > { %v2553_v15 = vpop.f32.mrb[7].mxu1  ;;  %v1480_v16 = vsel %vm1166_vm2, %v1467_v14, -inf }
 0x4ea   : > { %1481 = vmax.xlane.f32.xlu0 %v1480_v16 }
 0x4f7   : > { %1018 = vrot.lane.b32.xlu1 %v3522_v26, %s3114_s10 }
 0x56b   : > { %v1473_v17 = vpop.xlane.xlu1 %1472 }
 0x56c   : > { %v1483_v18 = vsub.f32 %v1239_v3, %v1473_v17 }
 0x56e   : > { %v1487_v19 = vmul.f32 1.442695, %v1483_v18 }
 0x56f   : > { %v1476_v20 = vpop.xlane.xlu0 %1475 }
 0x570   : > { %2765 = vpow2.f32 %v1487_v19  ;;  %v1484_v21 = vsub.f32 %v1315_v6, %v1476_v20 }
 0x572   : > { %v1489_v22 = vmul.f32 1.442695, %v1484_v21 }
 0x573   : > { %v1479_v23 = vpop.xlane.xlu1 %1478 }
 0x574   : > { %2767 = vpow2.f32 %v1489_v22  ;;  %v1485_v24 = vsub.f32 %v1391_v9, %v1479_v23 }
 0x576   : > { %v1491_v25 = vmul.f32 1.442695, %v1485_v24 }
 0x577   : > { %v1482_v27 = vpop.xlane.xlu0 %1481  ;;  %v1019_v41 = vpop.permute.xlu1 %1018 }
 0x578   : > { %2769 = vpow2.f32 %v1491_v25  ;;  %v1486_v31 = vsub.f32 %v1467_v14, %v1482_v27 }
 0x57a   : > { %v3607_v32 = vpop.eup %2765  ;;  %v1493_v33 = vmul.f32 1.442695, %v1486_v31 }
 0x57b   : > { %v1495_v26 = vsel %vm1166_vm2, %v3607_v32, 0.0 }
 0x57c   : > { %2771 = vpow2.f32 %v1493_v33  ;;  %1496 = vadd.xlane.f32.xlu1 %v1495_v26 }
 0x57e   : > { %v3611_v34 = vpop.eup %2767 }
 0x57f   : > { %v1498_v35 = vsel %vm1166_vm2, %v3611_v34, 0.0 }
 0x580   : > { %1499 = vadd.xlane.f32.xlu0 %v1498_v35 }
 0x582   : > { %v3615_v36 = vpop.eup %2769 }
 0x583   : > { %v1501_v37 = vsel %vm1166_vm2, %v3615_v36, 0.0 }
 0x584   : > { %1502 = vadd.xlane.f32.xlu1 %v1501_v37 }
 0x586   : > { %v3619_v38 = vpop.eup %2771 }
 0x587   : > { %v1504_v39 = vsel %vm1166_vm2, %v3619_v38, 0.0 }
 0x588   : > { %1505 = vadd.xlane.f32.xlu0 %v1504_v39 }
 0x595   : > { %1022 = vrot.lane.b32.xlu1 %v3531_v29, %s3114_s10 }
 0x599   : > { %1024 = vrot.lane.b32.xlu1 %v3534_v30, %s3114_s10 }
 0x59e   : > { %1020 = vrot.lane.b32.xlu0 %v3528_v28, %s3114_s10  ;;  %s3828_s10 = sld [smem:[#allocation30_spill]] }
 0x609   : > { %v1497_v42 = vpop.xlane.xlu1 %1496 }
 0x60a   : > { %2773 = vrcp.f32 %v1497_v42 }
 0x60d   : > { %v1500_v43 = vpop.xlane.xlu0 %1499 }
 0x60e   : > { %2775 = vrcp.f32 %v1500_v43 }
 0x611   : > { %v1503_v44 = vpop.xlane.xlu1 %1502 }
 0x612   : > { %2777 = vrcp.f32 %v1503_v44 }
 0x614   : > { %v2774_v8 = vpop.eup %2773 }
 0x615   : > { %v1023_v45 = vpop.permute.xlu1 %1022  ;;  %v1506_v46 = vpop.xlane.xlu0 %1505  ;;  %v1511_v24 = vmul.f32 %v2774_v8, %v3607_v32  ;;  %v1960_v32 = vld [vmem:[#allocation8] sm:$0xff] }
 0x616   : > { %v1030_v47 = vcombine.low %v1019_v41, %v1023_v45  ;;  %v1031_v48 = vcombine.high %v1019_v41, %v1023_v45  ;;  %2779 = vrcp.f32 %v1506_v46 }
 0x618   : > { %v1038_v29 = vrot.slane %v1030_v47, %v3541_v40  ;;  %v1045_v30 = vrot.slane %v1031_v48, %v3541_v40  ;;  %v2776_v15 = vpop.eup %2775 }
 0x619   : > { %v1025_v50 = vpop.permute.xlu1 %1024  ;;  %v1021_v51 = vpop.permute.xlu0 %1020  ;;  %v1512_v25 = vmul.f32 %v2776_v15, %v3611_v34  ;;  %v1961_v34 = vld [vmem:[#allocation8 + $0x8] sm:$0xff] }
 0x61a   : > { %v1046_v52 = vcombine.low %v1021_v51, %v1025_v50  ;;  %v1047_v53 = vcombine.high %v1021_v51, %v1025_v50  ;;  %v2614_v35 = vpack.c.bf16 %v1961_v34, %v1960_v32 }
 0x61c   : > { %v1054_v54 = vrot.slane %v1046_v52, %v3541_v40  ;;  %v1061_v28 = vrot.slane %v1047_v53, %v3541_v40  ;;  %v2778_v18 = vpop.eup %2777 }
 0x61d   : > { %v1513_v33 = vmul.f32 %v2778_v18, %v3615_v36 }
 0x61e   : > { %v1062_v55 = vcombine.low %v1038_v29, %v1054_v54  ;;  %v1063_v56 = vcombine.high %v1038_v29, %v1054_v54  ;;  %v1078_v57 = vcombine.low %v1045_v30, %v1061_v28  ;;  %v1079_v58 = vcombine.high %v1045_v30, %v1061_v28 }
 0x620   : > { %v1070_v59 = vrot.slane %v1062_v55, %v3551_v49  ;;  %v1077_v60 = vrot.slane %v1063_v56, %v3551_v49  ;;  %v1086_v61 = vrot.slane %v1078_v57, %v3551_v49  ;;  %v1093_v62 = vrot.slane %v1079_v58, %v3551_v49  ;;  %v2780_v23 = vpop.eup %2779  ;;  %v1962_v55 = vld [vmem:[#allocation8 + $0x10] sm:$0xff]  ;;  %v1963_v56 = vld [vmem:[#allocation8 + $0x18] sm:$0xff] }
 0x621   : > { %v1514_v26 = vmul.f32 %v2780_v23, %v3619_v38 }
 0x622   : > { %v1098_v63 = vcombine.low %v1070_v59, %v1077_v60  ;;  %v2457_v1 = vcombine.high %v1070_v59, %v1077_v60  ;;  %v1114_v2 = vcombine.low %v1086_v61, %v1093_v62  ;;  %v2458_v3 = vcombine.high %v1086_v61, %v1093_v62 }
 0x623   : > { %v2617_v61 = vpack.c.bf16 %v1963_v56, %v1962_v55  ;;  %v2163_v55 = vld [vmem:[#allocation14 + $0x18] sm:$0xff] }
 0x624   : > { %v1105_v4 = vrot.slane %v1098_v63, %v3541_v40  ;;  %v1113_v5 = vrot.slane %v2457_v1, %v3541_v40  ;;  %v1121_v6 = vrot.slane %v1114_v2, %v3541_v40  ;;  %v1129_v7 = vrot.slane %v2458_v3, %v3541_v40 }
 0x626   : > { %v1130_v9 = vcombine.low %v1105_v4, %v1113_v5  ;;  %v1146_v11 = vcombine.low %v1121_v6, %v1129_v7  ;;  %v1131_v12 = vcombine.high %v1105_v4, %v1113_v5  ;;  %v1147_v14 = vcombine.high %v1121_v6, %v1129_v7 }
 0x628   : > { %v1138_v16 = vrot.slane %v1130_v9, %v3551_v49  ;;  %v1154_v17 = vrot.slane %v1146_v11, %v3551_v49  ;;  %v1145_v19 = vrot.slane %v1131_v12, %v3551_v49  ;;  %v1161_v20 = vrot.slane %v1147_v14, %v3551_v49 }
 0x62a   : > { %v1162_v21 = vcombine.low %v1138_v16, %v1154_v17  ;;  %v1163_v22 = vcombine.high %v1138_v16, %v1154_v17  ;;  %v1164_v27 = vcombine.low %v1145_v19, %v1161_v20  ;;  %v1165_v31 = vcombine.high %v1145_v19, %v1161_v20 }
 0x62c   : > { %2555 = vmatpush3.msra.mxu0 %v1162_v21  ;;  %2560 = vmatpush3.msra.mxu1 %v1163_v22 }
 0x62d   : > { %2557 = vmatmul.mubr.msk.f32.vlgmr.msra.gmra.mrb[2].mxu0 %vm1166_vm2, %v1511_v24  ;;  %2562 = vmatmul.mubr.msk.f32.vlgmr.msra.gmra.mrb[8].mxu1 %vm1166_vm2, %v1512_v25 }
 0x62e   : > { %2564 = vmatprep.subr.mxu0 %v3107_v13  ;;  %2569 = vmatprep.subr.mxu1 %v3107_v13 }
 0x62f   : > { %2565 = vmatpush3.msra.mxu0 %v1164_v27  ;;  %2570 = vmatpush3.msra.mxu1 %v1165_v31  ;;  %v2474_v27 = vld [vmem:[#allocation10] ss:$0 sm:$0xff] }
 0x630   : > { %2566 = vmatprep.mubr.msk.f32.mxu0 %vm3106_vm1, %v3107_v13  ;;  %2571 = vmatprep.mubr.msk.f32.mxu1 %vm3106_vm1, %v3107_v13 }
 0x631   : > { %2567 = vmatmul.mubr.msk.f32.vlgmr.msra.gmra.mrb[4].mxu0 %vm1166_vm2, %v1513_v33  ;;  %2572 = vmatmul.mubr.msk.f32.vlgmr.msra.gmra.mrb[10].mxu1 %vm1166_vm2, %v1514_v26 }
 0x632   : > { %2613 = vmatprep.subr.bf16.mxu0 %v3105_v10  ;;  %2582 = vmatprep.mubr.msk.f32.mxu0 %vm3106_vm1, %v3107_v13 }
 0x633   : > { %2619 = vmatprep.subr.bf16.mxu1 %v3105_v10  ;;  %2593 = vmatprep.mubr.msk.f32.mxu1 %vm3106_vm1, %v3107_v13 }
 0x634   : > { %2615 = vmatpush3.bf16.msra.mxu0 %v2614_v35 }
 0x635   : > { %2616 = vmatprep.subr.bf16.mxu0 %v3105_v10 }
 0x638   : > { %2618 = vmatpush3.bf16.msra.mxu0 %v2617_v61 }
 0x639   : > { %2625 = vmatprep.subr.bf16.mxu0 %v3105_v10 }
 0x700   : > { %v1584_v36 = vpop.f32.mrb[2].mxu0  ;;  %v1657_v37 = vpop.f32.mrb[8].mxu1 }
 0x701   : > { %v2558_v38 = vpop.f32.mrb[3].mxu0  ;;  %v2563_v39 = vpop.f32.mrb[9].mxu1 }
 0x704   : > { %v1730_v41 = vpop.f32.mrb[4].mxu0  ;;  %v1803_v42 = vpop.f32.mrb[10].mxu1 }
 0x705   : > { %v1807_v43 = vcombine.low %v1584_v36, %v1730_v41  ;;  %v1808_v44 = vcombine.high %v1584_v36, %v1730_v41  ;;  %v1823_v45 = vcombine.low %v1657_v37, %v1803_v42  ;;  %v1824_v46 = vcombine.high %v1657_v37, %v1803_v42  ;;  %v2568_v47 = vpop.f32.mrb[5].mxu0  ;;  %v2573_v48 = vpop.f32.mrb[11].mxu1  ;;  %v2077_v41 = vld [vmem:[%s3825_s28 + $0x10] sm:$0xff]  ;;  %v2078_v42 = vld [vmem:[%s3825_s28 + $0x18] sm:$0xff] }
 0x707   : > { %v1815_v50 = vrot.slane %v1807_v43, %v3541_v40  ;;  %v1822_v51 = vrot.slane %v1808_v44, %v3541_v40  ;;  %v1831_v52 = vrot.slane %v1823_v45, %v3541_v40  ;;  %v1838_v53 = vrot.slane %v1824_v46, %v3541_v40  ;;  %v2160_v44 = vld [vmem:[#allocation14] sm:$0xff]  ;;  %v2161_v45 = vld [vmem:[#allocation14 + $0x8] sm:$0xff] }
 0x708   : > { %v2623_v43 = vpack.c.bf16 %v2078_v42, %v2077_v41  ;;  %v2626_v46 = vpack.c.bf16 %v2161_v45, %v2160_v44 }
 0x709   : > { %v1839_v29 = vcombine.low %v1815_v50, %v1831_v52  ;;  %v1840_v30 = vcombine.high %v1815_v50, %v1831_v52  ;;  %v1855_v54 = vcombine.low %v1822_v51, %v1838_v53  ;;  %v1856_v28 = vcombine.high %v1822_v51, %v1838_v53  ;;  %v2475_v52 = vld [vmem:[#allocation11] ss:$0 sm:$0xff] }
 0x70b   : > { %v1847_v57 = vrot.slane %v1839_v29, %v3551_v49  ;;  %v1854_v58 = vrot.slane %v1840_v30, %v3551_v49  ;;  %v1863_v59 = vrot.slane %v1855_v54, %v3551_v49  ;;  %v1870_v60 = vrot.slane %v1856_v28, %v3551_v49  ;;  %v2476_v29 = vld [vmem:[#allocation13] ss:$0 sm:$0xff]  ;;  %v2162_v28 = vld [vmem:[#allocation14 + $0x10] sm:$0xff] }
 0x70c   : > { %v2629_v56 = vpack.c.bf16 %v2163_v55, %v2162_v28 }
 0x70d   : > { %v1875_v62 = vcombine.low %v1847_v57, %v1854_v58  ;;  %v2471_v63 = vcombine.high %v1847_v57, %v1854_v58  ;;  %v1891_v1 = vcombine.low %v1863_v59, %v1870_v60  ;;  %v2472_v2 = vcombine.high %v1863_v59, %v1870_v60 }
 0x70f   : > { %v1882_v3 = vrot.slane %v1875_v62, %v3541_v40  ;;  %v1890_v4 = vrot.slane %v2471_v63, %v3541_v40  ;;  %v1898_v5 = vrot.slane %v1891_v1, %v3541_v40  ;;  %v1906_v6 = vrot.slane %v2472_v2, %v3541_v40  ;;  %v2480_v62 = vld [vmem:[%s3827_s12] ss:$0 sm:$0xff] }
 0x711   : > { %v1908_v7 = vcombine.high %v1882_v3, %v1890_v4  ;;  %v1924_v8 = vcombine.high %v1898_v5, %v1906_v6  ;;  %v1907_v9 = vcombine.low %v1882_v3, %v1890_v4  ;;  %v1923_v11 = vcombine.low %v1898_v5, %v1906_v6 }
 0x713   : > { %v1922_v12 = vrot.slane %v1908_v7, %v3551_v49  ;;  %v1938_v14 = vrot.slane %v1924_v8, %v3551_v49  ;;  %v1915_v15 = vrot.slane %v1907_v9, %v3551_v49  ;;  %v1931_v16 = vrot.slane %v1923_v11, %v3551_v49 }
 0x715   : > { %v1941_v17 = vcombine.low %v1922_v12, %v1938_v14  ;;  %v1940_v18 = vcombine.high %v1915_v15, %v1931_v16  ;;  %v1942_v19 = vcombine.high %v1922_v12, %v1938_v14  ;;  %v1939_v20 = vcombine.low %v1915_v15, %v1931_v16  ;;  %v2481_v15 = vld [vmem:[%s3828_s10] ss:$0 sm:$0xff] }
 0x717   : > { %1948 = vrot.lane.b32.xlu1 %v1941_v17, %s3115_s29  ;;  %1944 = vrot.lane.b32.xlu0 %v1940_v18, %s3116_s25 }
 0x71b   : > { %1952 = vrot.lane.b32.xlu0 %v1942_v19, %s3117_s23  ;;  %s3829_s23 = sld [smem:[#allocation31_spill]] }
 0x721   : > { %v2482_v17 = vld [vmem:[%s3829_s23] ss:$0 sm:$0xff] }
 0x789   : > { %v1945_v40 = vpop.permute.xlu0 %1944  ;;  %v1949_v21 = vpop.permute.xlu1 %1948 }
 0x78a   : > { %v1955_v22 = vsel %vm1166_vm2, %v1939_v20, %v1945_v40 }
 0x78b   : > { %v1957_v24 = vsel %vm1956_vm3, %v1955_v22, %v1949_v21 }
 0x78d   : > { %v1953_v23 = vpop.permute.xlu0 %1952 }
 0x78e   : > { %v1959_v25 = vsel %vm1958_vm4, %v1957_v24, %v1953_v23 }
 0x78f   : > { %2583 = vmatmul.mubr.msk.f32.vlgmr.msra.gmra.mrb[6].mxu0 %vm607_vm0, %v1959_v25 }
 0x790   : > { %2604 = vmatprep.mubr.msk.f32.mxu0 %vm3106_vm1, %v3107_v13  ;;  %v2075_v13 = vld [vmem:[%s3825_s28] sm:$0xff]  ;;  %2627 = vmatpush3.bf16.msra.mxu0 %v2626_v46 }
 0x791   : > { %2628 = vmatprep.subr.bf16.mxu0 %v3105_v10 }
 0x794   : > { %2630 = vmatpush3.bf16.msra.mxu0 %v2629_v56 }
 0x862   : > { %v2033_v49 = vpop.f32.mrb[6].mxu0 }
 0x863   : > { %v2037_v31 = vadd.f32 %v2033_v49, %v3499_v0  ;;  %v2584_v33 = vpop.f32.mrb[7].mxu0  ;;  %v2076_v0 = vld [vmem:[%s3825_s28 + $0x8] sm:$0xff] }
 0x864   : > { %v2620_v39 = vpack.c.bf16 %v2076_v0, %v2075_v13 }
 0x865   : > { %v2045_v26 = vadd.f32 %v2474_v27, %v2037_v31 }
 0x866   : > { %2621 = vmatpush3.bf16.msra.mxu1 %v2620_v39 }
 0x867   : > { %v2048_v32 = vsel %vm607_vm0, %v2045_v26, 0.0  ;;  %2622 = vmatprep.subr.bf16.mxu1 %v3105_v10  ;;  %v2477_v10 = vld [vmem:[%s3826_s15] ss:$0 sm:$0xff]  ;;  %s2484_s15 = sshll.u32 %s3220_s24, 7  ;;  %s3118_s24 = smov [#allocation16]  }
 0x868   : > { %2049 = vadd.xlane.f32.xlu1 %v2048_v32  ;;  %s3726_s3 = scalar_lea.hbm %s3830_s1, %s2484_s15  ;;  %s3015_s9 = sshll.u32 %s3118_s24, 4  ;;  %s3016_s9 = int_to_ptr.vmem [resolvable:$false] %s3015_s9 }
 0x869   : > { %s3017_s10 = scalar_lea.vmem %s3016_s9, 256  ;;  %p3018_p2 = scmp.lt.s32.totalorder %s3728_s22, %s3016_s9 }
 0x86a   : > { %2624 = vmatpush3.bf16.msra.mxu1 %v2623_v43  ;;  %p3019_p0 = scmp.lt.s32.totalorder %s3017_s10, %s3011_s17 }
 0x86c   : > { %p3020_p6 = por %p3019_p0, %p3018_p2 }
 0x86e   : > { %p3021_p10 = pnand %p3020_p6, %p3014_p3 }
 0x8f5   : > { %v2050_v34 = vpop.xlane.xlu1 %2049 }
 0x8f6   : > { %v2051_v35 = vmul.f32 0.03125, %v2050_v34 }
 0x8f8   : > { %v2052_v36 = vsub.f32 %v2045_v26, %v2051_v35 }
 0x8fa   : > { %v2053_v37 = vmul.f32 %v2052_v36, %v2052_v36 }
 0x8fc   : > { %v2054_v38 = vsel %vm607_vm0, %v2053_v37, 0.0 }
 0x8fd   : > { %2055 = vadd.xlane.f32.xlu0 %v2054_v38 }
 0x98a   : > { %v2056_v47 = vpop.xlane.xlu0 %2055 }
 0x98b   : > { %v2057_v48 = vmul.f32 0.03125, %v2056_v47 }
 0x98d   : > { %v2058_v50 = vadd.f32 1e-05, %v2057_v48 }
 0x98f   : > { %2781 = vrsqrt.f32 %v2058_v50 }
 0x999   : > { %v2782_v51 = vpop.eup %2781 }
 0x99a   : > { %v2060_v53 = vmul.f32 %v2782_v51, %v2052_v36 }
 0x99c   : > { %v2067_v30 = vmul.f32 %v2475_v52, %v2060_v53 }
 0x99e   : > { %v2074_v54 = vadd.f32 %v2476_v29, %v2067_v30 }
 0x9a0   : > { %2594 = vmatmul.mubr.msk.f32.vlgmr.msra.gmra.mrb[12].mxu1 %vm607_vm0, %v2074_v54 }
 0xa73   : > { %v2155_v57 = vpop.f32.mrb[12].mxu1 }
 0xa74   : > { %v2156_v58 = vadd.f32 %v2477_v10, %v2155_v57  ;;  %v2595_v59 = vpop.f32.mrb[13].mxu1 }
 0xa76   : > { %v2159_v60 = vmax.f32 %v2156_v58, 0.0 }
 0xa78   : > { %2605 = vmatmul.mubr.msk.f32.vlgmr.msra.gmra.mrb[8].mxu0 %vm607_vm0, %v2159_v60 }
 0xb4b   : > { %v2233_v61 = vpop.f32.mrb[8].mxu0 }
 0xb4c   : > { %v2237_v63 = vadd.f32 %v2233_v61, %v2045_v26  ;;  %v2606_v1 = vpop.f32.mrb[9].mxu0 }
 0xb4e   : > { %v2245_v2 = vadd.f32 %v2480_v62, %v2237_v63 }
 0xb50   : > { %v2248_v3 = vsel %vm607_vm0, %v2245_v2, 0.0 }
 0xb51   : > { %2249 = vadd.xlane.f32.xlu0 %v2248_v3 }
 0xbde   : > { %v2250_v4 = vpop.xlane.xlu0 %2249 }
 0xbdf   : > { %v2251_v5 = vmul.f32 0.03125, %v2250_v4 }
 0xbe1   : > { %v2252_v6 = vsub.f32 %v2245_v2, %v2251_v5 }
 0xbe3   : > { %v2253_v7 = vmul.f32 %v2252_v6, %v2252_v6 }
 0xbe5   : > { %v2254_v8 = vsel %vm607_vm0, %v2253_v7, 0.0 }
 0xbe6   : > { %2255 = vadd.xlane.f32.xlu1 %v2254_v8 }
 0xc73   : > { %v2256_v9 = vpop.xlane.xlu1 %2255 }
 0xc74   : > { %v2257_v11 = vmul.f32 0.03125, %v2256_v9 }
 0xc76   : > { %v2258_v12 = vadd.f32 1e-05, %v2257_v11 }
 0xc78   : > { %2783 = vrsqrt.f32 %v2258_v12 }
 0xc82   : > { %v2784_v14 = vpop.eup %2783 }
 0xc83   : > { %v2260_v16 = vmul.f32 %v2784_v14, %v2252_v6 }
 0xc85   : > { %v2267_v18 = vmul.f32 %v2481_v15, %v2260_v16 }
 0xc87   : > { %v2274_v19 = vadd.f32 %v2482_v17, %v2267_v18 }
 0xc89   : > { %2275 = vst.msk [vmem:[%s603_s16] sm:$0xff] %vm607_vm0, %v2274_v19 }
 0xc8a   : > { %3024 = shalt.err (!%p3021_p10)
}
 0xc8b   : > { %s3025_s0 = scalar_lea.hbm %s3726_s3, 128  ;;  %s3029_s25 = scalar_lea.hbm %s3830_s1, 256 }
 0xc8c   : > { %p3026_p11 = scmp.ne.s32.totalorder %s3726_s3, %s3025_s0  ;;  %p3030_p9 = scmp.lt.u32.totalorder %s3726_s3, %s3830_s1 }
 0xc8d   : > { %p3031_p7 = scmp.lt.u32.totalorder %s3029_s25, %s3025_s0  ;;  %p3033_p12 = scmp.lt.u32.totalorder %s3025_s0, %s3726_s3 }
 0xc8e   : > { %p3027_p8 = pnand %p3026_p11, %p3831_p13 }
 0xc8f   : > { %p3032_p4 = por %p3031_p7, %p3030_p9 }
 0xc90   : > { %p3028_p5 = pneg %p3027_p8 }
 0xc91   : > { %p3034_p1 = por %p3033_p12, %p3032_p4 }
 0xc93   : > { %p3035_p3 = pnand %p3034_p1, %p3028_p5 }
 0xc95   : > { %3038 = shalt.err (!%p3035_p3)
}
 0xc96   : > { %2661 = dma.vmem_to_hbm [thread:$0]  (%p3831_p13), %s3728_s22, 128, %s3726_s3, %s2277_s30  }
 0xc97 PF: > { %s2302_s16 = sand.u32 1, %s3081_s18   ;;  %p3832_p2 = scmp.ne.s32.totalorder %s3811_s2, 0 }
 0xc98   : > { %p3833_p0 = scmp.ge.s32.totalorder %s3093_s21, 2  ;;  %s2303_s12 = scalar_lea.sflag [#allocation4], %s2302_s16 }
 0xc9a   : > { %p2690_p6 = pnand %p3833_p0, %p3832_p2 }
 0xc9c   : > { %3076 = dma.done.wait (!%p2690_p6), %s2303_s12, 128  }
 0xc9d   : > { %3078 = vsyncadd (!%p2690_p6), %s2303_s12, 4294967168  ;;  %p32_p10 = scmp.ge.s32.totalorder %s3403_s26, 4   ;;  %s3834_s18 = smov %s3085_s19 }
 0xc9e   : > { %s3835_s19 = smov %s3089_s20  ;;  %s3836_s20 = smov %s3415_s27 }
 0xc9f   : > { %s3837_s21 = smov %s3403_s26  ;;  %34 = sbr.rel (!%p32_p10) target bundleno = 20 (0x14), region = 153 }
 0xca6   :  { %2308 = vsyncpa [#allocation3], 1 }
 0xca7   :  { %2310 = vsyncpa [#allocation3 + $0x1], 1 }
 0xca8   :  { %2311 = vsyncpa [#allocation6], 1 }
 0xca9   :  { %2312 = vsyncpa [#allocation9], 1 }
 0xcaa   :  { %2313 = vsyncpa [#allocation12], 1 }
 0xcab   :  { %2314 = vsyncpa [#allocation15], 1 }
 0xcac   :  { %2315 = vsyncpa [#allocation4], 1 }
 0xcad   :  { %2317 = vsyncpa [#allocation4 + $0x1], 1 }

</bundles_post_ra>
